<compile_context>
chip_gen: v6e
topology: v6e:2x2x1
jax: 0.10.0
libtpu: 0.0.40
codegen_flags: <defaults>
</compile_context>

<pallas_src>
import math
import jax
import jax.numpy as jnp
from jax import lax
from jax.experimental import pallas as pl
from jax.experimental.pallas import tpu as pltpu

# ----- model hyper-parameters (match the PyTorch module, small hidden for test) -----
INPUT_DIM = 3
HIDDEN = 32            # hidden_dim
HEADS = 4              # num_heads
HEAD_DIM = HIDDEN // HEADS
LAYERS = 3             # num_layers
NUM_STEPS = 200
MAX_LEN = 512
EXPANSION = 4
LN_EPS = 1e-5
MASK_NEG = -1e30       # additive mask bias (large finite negative, not -inf)

QK_COLS = 2 * HIDDEN                 # [ q (H, pre-scaled) | k (H) ]
VO_COLS = HEADS * HIDDEN             # per-head (Wv_h @ Wout_h) blocks
FUSED_COLS = QK_COLS + VO_COLS       # 192


def _layer_norm(x, gamma, beta):
    """LayerNorm over the last axis (biased variance, eps=1e-5)."""
    mu = jnp.mean(x, axis=-1, keepdims=True)
    xc = x - mu
    var = jnp.mean(xc * xc, axis=-1, keepdims=True)
    return xc * lax.rsqrt(var + LN_EPS) * gamma + beta


# ------------------------------ Pallas kernel ---------------------------------
def se3_block_kernel(
    h_ref,        # (S, H)           input hidden state for this batch element
    mbias_ref,    # (1, S)           additive key-mask bias (0 / -1e30)
    mcol_ref,     # (S, 1)           float token mask
    pos_ref,      # (HEADS, S, S)    relative-position attention bias (this layer)
    wf_ref,       # (H, FUSED_COLS)  fused [q*scale | k | Wv@Wout] projection
    bf_ref,       # (1, FUSED_COLS)
    bout_ref,     # (1, H)           output-projection bias
    geo_ref,      # SMEM (LAYERS, 3*HEADS): [w_dist | w_sq | bias] per layer
    w1_ref, b1_ref,    # (H, 4H), (1, 4H)
    w2_ref, b2_ref,    # (4H, H), (1, H)
    g1_ref, be1_ref, g2_ref, be2_ref,   # (1, H) each
    o_ref,        # (S, H)  output block — ALSO the layer carry (index const over l)
):
    l = pl.program_id(1)

    @pl.when(l == 0)
    def _():
        o_ref[...] = h_ref[...]

    x = o_ref[...]                                    # carried hidden state (S, H)
    S = x.shape[0]

    # ---- pairwise squared distances via Gram identity (no (S,S,H) tensor) ----
    gram = lax.dot_general(x, x, (((1,), (1,)), ((), ())),
                           preferred_element_type=jnp.float32)        # (S,S) <xi,xj>
    xx = x * x
    n_i = jnp.sum(xx, axis=-1, keepdims=True)                         # (S,1) ||x_i||^2
    n_j = lax.dot_general(jnp.ones((1, HIDDEN), jnp.float32), xx,
                          (((1,), (1,)), ((), ())),
                          preferred_element_type=jnp.float32)         # (1,S) ||x_j||^2
    sq = jnp.maximum(n_i + n_j - 2.0 * gram, 0.0)                     # (S,S)
    dist = jnp.sqrt(sq)
    mbias = mbias_ref[...]                                            # (1,S)

    # ---- fused lane-dense projection: [q*1/sqrt(d) | k | per-head Wv@Wout] ----
    proj = jnp.dot(x, wf_ref[...], preferred_element_type=jnp.float32) + bf_ref[...]

    # ---- per-head attention (unrolled; one transient (S,S) logits tile each) ----
    attn = jnp.zeros((S, HIDDEN), jnp.float32)
    for hh in range(HEADS):
        q_h = proj[:, hh * HEAD_DIM:(hh + 1) * HEAD_DIM]              # (S, d) pre-scaled
        k_h = proj[:, HIDDEN + hh * HEAD_DIM: HIDDEN + (hh + 1) * HEAD_DIM]
        logits = lax.dot_general(q_h, k_h, (((1,), (1,)), ((), ())),
                                 preferred_element_type=jnp.float32)  # (S, S)
        logits = (logits + pos_ref[hh] + mbias
                  + dist * geo_ref[l, hh]
                  + sq * geo_ref[l, HEADS + hh]
                  + geo_ref[l, 2 * HEADS + hh])
        m = jnp.max(logits, axis=-1, keepdims=True)
        e = jnp.exp(logits - m)
        p = e * pl.reciprocal(jnp.sum(e, axis=-1, keepdims=True), approx=True)
        vp_h = proj[:, QK_COLS + hh * HIDDEN: QK_COLS + (hh + 1) * HIDDEN]   # (S, H)
        attn = attn + jnp.dot(p, vp_h, preferred_element_type=jnp.float32)
    attn = attn + bout_ref[...]

    # ---- residual + LayerNorm 1 ----
    x1 = _layer_norm(x + attn, g1_ref[...], be1_ref[...])

    # ---- feed-forward (relu(fc1) -> fc2 -> * mask) ----
    f = jnp.dot(x1, w1_ref[...], preferred_element_type=jnp.float32) + b1_ref[...]
    f = jnp.maximum(f, 0.0)
    f = jnp.dot(f, w2_ref[...], preferred_element_type=jnp.float32) + b2_ref[...]
    f = f * mcol_ref[...]

    # ---- residual + LayerNorm 2 ; write carry / output ----
    o_ref[...] = _layer_norm(x1 + f, g2_ref[...], be2_ref[...])


def run_transformer_stack(h, mask_bias, mask_col, stacks):
    """All LAYERS transformer layers in a single pallas_call; grid = (batch, layer)."""
    B, S, H = h.shape

    def b_spec(arr):           # per-batch block, constant across layers
        nd = arr.ndim
        return pl.BlockSpec((None,) + tuple(arr.shape[1:]),
                            lambda b, l, nd=nd: (b,) + (0,) * (nd - 1))

    def l_spec(arr):           # per-layer block, constant across batch
        nd = arr.ndim
        return pl.BlockSpec((None,) + tuple(arr.shape[1:]),
                            lambda b, l, nd=nd: (l,) + (0,) * (nd - 1))

    in_specs = [
        b_spec(h),
        b_spec(mask_bias),
        b_spec(mask_col),
        l_spec(stacks['pos']),
        l_spec(stacks['w_fused']), l_spec(stacks['b_fused']), l_spec(stacks['b_out']),
        pl.BlockSpec(memory_space=pltpu.MemorySpace.SMEM),            # geo scalars
        l_spec(stacks['w1']), l_spec(stacks['b1']),
        l_spec(stacks['w2']), l_spec(stacks['b2']),
        l_spec(stacks['g1']), l_spec(stacks['be1']),
        l_spec(stacks['g2']), l_spec(stacks['be2']),
    ]
    # TODO(synk): for large S, flatten the (S,H) output block to a lane-dense
    #             (1, S*H) out_spec (H=32 < 128 makes each store a masked vst).
    return pl.pallas_call(
        se3_block_kernel,
        grid=(B, LAYERS),
        in_specs=in_specs,
        out_specs=pl.BlockSpec((None, S, H), lambda b, l: (b, 0, 0)),
        out_shape=jax.ShapeDtypeStruct((B, S, H), jnp.float32),
        compiler_params=pltpu.CompilerParams(
            dimension_semantics=("parallel", "arbitrary")),
    )(h, mask_bias, mask_col, stacks['pos'],
      stacks['w_fused'], stacks['b_fused'], stacks['b_out'],
      stacks['geo'],
      stacks['w1'], stacks['b1'], stacks['w2'], stacks['b2'],
      stacks['g1'], stacks['be1'], stacks['g2'], stacks['be2'])


# --------------------------- host-side weight prep -----------------------------
def prepare_stacks(params, S):
    """Re-layout per-layer params once (outside the jitted forward).

    Folds 1/sqrt(head_dim) into the q columns and Wout into the V projection
    (per head), and expands the relative-position bias from the small
    (2*MAX_LEN-1, HEADS) table.
    """
    D = HEAD_DIM
    scale = 1.0 / math.sqrt(D)
    pos_idx = jnp.arange(S)[:, None] - jnp.arange(S)[None, :] + (MAX_LEN - 1)

    keys = ('pos', 'w_fused', 'b_fused', 'b_out', 'geo',
            'w1', 'b1', 'w2', 'b2', 'g1', 'be1', 'g2', 'be2')
    acc = {k: [] for k in keys}
    for lp in params['layers']:
        wq = lp['w_qkv'][:, :HIDDEN] * scale                     # (H, H) per-head blocks
        bq = lp['b_qkv'][:, :HIDDEN] * scale
        wk = lp['w_qkv'][:, HIDDEN:2 * HIDDEN]
        bk = lp['b_qkv'][:, HIDDEN:2 * HIDDEN]
        wv = lp['w_qkv'][:, 2 * HIDDEN:].reshape(HIDDEN, HEADS, D)
        bv = lp['b_qkv'][:, 2 * HIDDEN:].reshape(1, HEADS, D)
        wout = lp['w_out'].reshape(HEADS, D, HIDDEN)             # rows h*D+d -> (h,d,o)
        wvo = jnp.einsum('khd,hdo->kho', wv, wout).reshape(HIDDEN, HEADS * HIDDEN)
        bvo = jnp.einsum('bhd,hdo->bho', bv, wout).reshape(1, HEADS * HIDDEN)
        acc['w_fused'].append(jnp.concatenate([wq, wk, wvo], axis=1))   # (H, 192)
        acc['b_fused'].append(jnp.concatenate([bq, bk, bvo], axis=1))   # (1, 192)
        acc['b_out'].append(lp['b_out'])
        acc['geo'].append(jnp.concatenate([lp['w_geo'][0], lp['w_geo'][1], lp['b_geo'][0]]))
        # relative-position bias from the tiny (2*MAX_LEN-1, HEADS) table
        tab = params['rel_pos'] @ lp['w_pos'] + lp['b_pos']
        acc['pos'].append(jnp.transpose(tab[pos_idx], (2, 0, 1)))       # (HEADS, S, S)
        for k in ('w1', 'b1', 'w2', 'b2', 'g1', 'be1', 'g2', 'be2'):
            acc[k].append(lp[k])
    return {k: jnp.stack(v, axis=0) for k, v in acc.items()}


# -------------------------------- full forward ---------------------------------
@jax.jit
def se3_forward(glue, stacks, x, t, mask):
    B, S, _ = x.shape
    maskf = mask.astype(jnp.float32)
    # time embedding + input projection (tiny glue, plain JAX)
    t1 = t.astype(jnp.float32).reshape(-1, 1) / float(NUM_STEPS)
    t_embed = jax.nn.relu(t1 @ glue['w_t'] + glue['b_t'])              # (B, H)
    t_embed = jnp.broadcast_to(t_embed[:, None, :], (B, S, HIDDEN))
    h = jax.nn.relu(jnp.concatenate([x, t_embed], axis=-1) @ glue['w_in'] + glue['b_in'])

    mask_bias = jnp.where(mask[:, None, :], 0.0, MASK_NEG).astype(jnp.float32)  # (B,1,S)
    mask_col = maskf[:, :, None]                                                 # (B,S,1)

    h = run_transformer_stack(h, mask_bias, mask_col, stacks)

    out = h @ glue['w_fc'] + glue['b_fc']
    return out * mask_col


# ----------------------------- pure-JAX reference -------------------------------
def reference_forward(params, x, t, mask):
    B, S, _ = x.shape
    maskf = mask.astype(jnp.float32)
    t1 = t.astype(jnp.float32).reshape(-1, 1) / float(NUM_STEPS)
    t_embed = jax.nn.relu(t1 @ params['w_t'] + params['b_t'])
    t_embed = jnp.broadcast_to(t_embed[:, None, :], (B, S, HIDDEN))
    h = jax.nn.relu(jnp.concatenate([x, t_embed], -1) @ params['w_in'] + params['b_in'])
    pos_idx = jnp.arange(S)[:, None] - jnp.arange(S)[None, :] + (MAX_LEN - 1)
    rel = params['rel_pos'][pos_idx]
    for lp in params['layers']:
        diff = h[:, :, None, :] - h[:, None, :, :]
        sq = jnp.sum(diff * diff, -1)
        dist = jnp.sqrt(sq)
        geo = jnp.stack([dist, sq], -1)                                # (B,S,S,2)
        geo_w = jnp.transpose(geo @ lp['w_geo'] + lp['b_geo'], (0, 3, 1, 2))
        pos_w = jnp.transpose(rel @ lp['w_pos'] + lp['b_pos'], (2, 0, 1))
        qkv = h @ lp['w_qkv'] + lp['b_qkv']
        q = qkv[..., :HIDDEN].reshape(B, S, HEADS, HEAD_DIM)
        k = qkv[..., HIDDEN:2 * HIDDEN].reshape(B, S, HEADS, HEAD_DIM)
        v = qkv[..., 2 * HIDDEN:].reshape(B, S, HEADS, HEAD_DIM)
        logits = jnp.einsum('bihd,bjhd->bhij', q, k) / math.sqrt(HEAD_DIM)
        logits = logits + geo_w + pos_w[None]
        logits = jnp.where(mask[:, None, None, :], logits, -jnp.inf)
        p = jax.nn.softmax(logits, -1)
        attn = jnp.einsum('bhij,bjhd->bihd', p, v).reshape(B, S, HIDDEN)
        attn = attn @ lp['w_out'] + lp['b_out']
        x1 = _layer_norm(h + attn, lp['g1'], lp['be1'])
        f = jax.nn.relu(x1 @ lp['w1'] + lp['b1']) @ lp['w2'] + lp['b2']
        f = f * maskf[:, :, None]
        h = _layer_norm(x1 + f, lp['g2'], lp['be2'])
    out = h @ params['w_fc'] + params['b_fc']
    return out * maskf[:, :, None]


# -------------------------------- parameter init --------------------------------
def _linear_init(key, fan_in, fan_out):
    kw, kb = jax.random.split(key)
    bound = 1.0 / math.sqrt(fan_in)
    w = jax.random.uniform(kw, (fan_in, fan_out), jnp.float32, -bound, bound)
    b = jax.random.uniform(kb, (1, fan_out), jnp.float32, -bound, bound)
    return w, b


def init_params(key):
    keys = jax.random.split(key, 4 + LAYERS)
    w_t, b_t = _linear_init(keys[0], 1, HIDDEN)
    w_in, b_in = _linear_init(keys[1], INPUT_DIM + HIDDEN, HIDDEN)
    rel_pos = jax.random.normal(keys[2], (2 * MAX_LEN - 1, HIDDEN), jnp.float32)
    w_fc, b_fc = _linear_init(keys[3], HIDDEN, INPUT_DIM)
    layers = []
    for i in range(LAYERS):
        lk = jax.random.split(keys[4 + i], 6)
        w_qkv, b_qkv = _linear_init(lk[0], HIDDEN, 3 * HIDDEN)
        w_out, b_out = _linear_init(lk[1], HIDDEN, HIDDEN)
        w_geo, b_geo = _linear_init(lk[2], 2, HEADS)
        w_pos, b_pos = _linear_init(lk[3], HIDDEN, HEADS)
        w1, b1 = _linear_init(lk[4], HIDDEN, EXPANSION * HIDDEN)
        w2, b2 = _linear_init(lk[5], EXPANSION * HIDDEN, HIDDEN)
        layers.append(dict(
            w_qkv=w_qkv, b_qkv=b_qkv, w_out=w_out, b_out=b_out,
            w_geo=w_geo, b_geo=b_geo, w_pos=w_pos, b_pos=b_pos,
            w1=w1, b1=b1, w2=w2, b2=b2,
            g1=jnp.ones((1, HIDDEN), jnp.float32), be1=jnp.zeros((1, HIDDEN), jnp.float32),
            g2=jnp.ones((1, HIDDEN), jnp.float32), be2=jnp.zeros((1, HIDDEN), jnp.float32)))
    return dict(w_t=w_t, b_t=b_t, w_in=w_in, b_in=b_in, rel_pos=rel_pos,
                w_fc=w_fc, b_fc=b_fc, layers=layers)


# ------------------------------------ main ---------------------------------------
if __name__ == "__main__":
    key = jax.random.PRNGKey(0)
    kp, kx, kt = jax.random.split(key, 3)
    params = init_params(kp)

    B, S = 2, 8
    x = jax.random.normal(kx, (B, S, INPUT_DIM), jnp.float32)
    t = jax.random.randint(kt, (B,), 0, NUM_STEPS)
    mask = jnp.array([[True] * S, [True] * (S - 2) + [False] * 2])   # (B, S) bool

    # weight re-layout / pos-bias expansion done ONCE, outside the jitted forward
    stacks = prepare_stacks(params, S)
    glue = {k: params[k] for k in ('w_t', 'b_t', 'w_in', 'b_in', 'w_fc', 'b_fc')}

    out = jax.block_until_ready(se3_forward(glue, stacks, x, t, mask))
    ref = jax.block_until_ready(reference_forward(params, x, t, mask))

    assert out.shape == (B, S, INPUT_DIM)
    assert bool(jnp.all(jnp.isfinite(out)))
    max_diff = float(jnp.max(jnp.abs(out - ref)))
    assert max_diff < 5e-2, f"mismatch vs reference: {max_diff}"
    print("KERNEL_OK")
</pallas_src>

<mosaic_0001>
module attributes {stable_mosaic.version = 11 : i64} {
  func.func @se3_block_kernel(%arg0: i32, %arg1: i32, %arg2: memref<1x8x32xf32, #tpu.memory_space<vmem>>, %arg3: memref<1x1x8xf32, #tpu.memory_space<vmem>>, %arg4: memref<1x8x1xf32, #tpu.memory_space<vmem>>, %arg5: memref<1x4x8x8xf32, #tpu.memory_space<vmem>>, %arg6: memref<1x32x192xf32, #tpu.memory_space<vmem>>, %arg7: memref<1x1x192xf32, #tpu.memory_space<vmem>>, %arg8: memref<1x1x32xf32, #tpu.memory_space<vmem>>, %arg9: memref<3x12xf32, #tpu.memory_space<smem>>, %arg10: memref<1x32x128xf32, #tpu.memory_space<vmem>>, %arg11: memref<1x1x128xf32, #tpu.memory_space<vmem>>, %arg12: memref<1x128x32xf32, #tpu.memory_space<vmem>>, %arg13: memref<1x1x32xf32, #tpu.memory_space<vmem>>, %arg14: memref<1x1x32xf32, #tpu.memory_space<vmem>>, %arg15: memref<1x1x32xf32, #tpu.memory_space<vmem>>, %arg16: memref<1x1x32xf32, #tpu.memory_space<vmem>>, %arg17: memref<1x1x32xf32, #tpu.memory_space<vmem>>, %arg18: memref<1x8x32xf32, #tpu.memory_space<vmem>>) attributes {dimension_semantics = [#tpu.dimension_semantics<parallel>, #tpu.dimension_semantics<arbitrary>], iteration_bounds = array<i64: 2, 3>, scalar_prefetch = 0 : i64, scratch_operands = 0 : i64, tpu.core_type = #tpu.core_type<tc>, window_params = [{transform_indices = @transform_0, window_bounds = array<i64: 1, 8, 32>}, {transform_indices = @transform_1, window_bounds = array<i64: 1, 1, 8>}, {transform_indices = @transform_2, window_bounds = array<i64: 1, 8, 1>}, {transform_indices = @transform_3, window_bounds = array<i64: 1, 4, 8, 8>}, {transform_indices = @transform_4, window_bounds = array<i64: 1, 32, 192>}, {transform_indices = @transform_5, window_bounds = array<i64: 1, 1, 192>}, {transform_indices = @transform_6, window_bounds = array<i64: 1, 1, 32>}, {transform_indices = @transform_7, window_bounds = array<i64: 3, 12>}, {transform_indices = @transform_8, window_bounds = array<i64: 1, 32, 128>}, {transform_indices = @transform_9, window_bounds = array<i64: 1, 1, 128>}, {transform_indices = @transform_10, window_bounds = array<i64: 1, 128, 32>}, {transform_indices = @transform_11, window_bounds = array<i64: 1, 1, 32>}, {transform_indices = @transform_12, window_bounds = array<i64: 1, 1, 32>}, {transform_indices = @transform_13, window_bounds = array<i64: 1, 1, 32>}, {transform_indices = @transform_14, window_bounds = array<i64: 1, 1, 32>}, {transform_indices = @transform_15, window_bounds = array<i64: 1, 1, 32>}, {transform_indices = @transform_16, window_bounds = array<i64: 1, 8, 32>}]} {
    %c0_i32 = arith.constant 0 : i32
    %0 = arith.cmpi eq, %arg1, %c0_i32 : i32
    %1 = arith.extui %0 : i1 to i32
    %c0_i32_0 = arith.constant 0 : i32
    %2 = arith.cmpi ne, %1, %c0_i32_0 : i32
    scf.if %2 {
      %c0_98 = arith.constant 0 : index
      %c0_99 = arith.constant 0 : index
      %c0_100 = arith.constant 0 : index
      %247 = vector.load %arg2[%c0_98, %c0_99, %c0_100] : memref<1x8x32xf32, #tpu.memory_space<vmem>>, vector<1x8x32xf32>
      %248 = vector.shape_cast %247 : vector<1x8x32xf32> to vector<8x32xf32>
      %c0_101 = arith.constant 0 : index
      %c0_102 = arith.constant 0 : index
      %c0_103 = arith.constant 0 : index
      %249 = vector.load %arg18[%c0_101, %c0_102, %c0_103] : memref<1x8x32xf32, #tpu.memory_space<vmem>>, vector<1x8x32xf32>
      %250 = vector.shape_cast %249 : vector<1x8x32xf32> to vector<8x32xf32>
      %251 = vector.shape_cast %248 : vector<8x32xf32> to vector<1x8x32xf32>
      tpu.vector_store %arg18[%c0_101, %c0_102, %c0_103], %251 {strides = array<i32>} : memref<1x8x32xf32, #tpu.memory_space<vmem>>, vector<1x8x32xf32>,
    } else {
    }
    %c0 = arith.constant 0 : index
    %c0_1 = arith.constant 0 : index
    %c0_2 = arith.constant 0 : index
    %3 = vector.load %arg18[%c0, %c0_1, %c0_2] : memref<1x8x32xf32, #tpu.memory_space<vmem>>, vector<1x8x32xf32>
    %4 = vector.shape_cast %3 : vector<1x8x32xf32> to vector<8x32xf32>
    %cst = arith.constant dense<0.000000e+00> : vector<8x8xf32>
    %5 = tpu.matmul %4, %4, %cst {dimension_numbers = #tpu.dot_dimension_numbers<[1], [1], [0], [0], [0, 0, 1, 0], [], []>} : vector<8x32xf32>, vector<8x32xf32>, vector<8x8xf32> -> vector<8x8xf32>
    %6 = arith.mulf %4, %4 : vector<8x32xf32>
    %cst_3 = arith.constant dense<0.000000e+00> : vector<8xf32>
    %7 = vector.multi_reduction <add>, %6, %cst_3 [1] : vector<8x32xf32> to vector<8xf32>
    %8 = vector.shape_cast %7 : vector<8xf32> to vector<8x1xf32>
    %cst_4 = arith.constant 1.000000e+00 : f32
    %9 = vector.broadcast %cst_4 : f32 to vector<1x32xf32>
    %cst_5 = arith.constant dense<0.000000e+00> : vector<1x8xf32>
    %10 = tpu.matmul %9, %6, %cst_5 {dimension_numbers = #tpu.dot_dimension_numbers<[1], [1], [0], [0], [0, 0, 1, 0], [], []>} : vector<1x32xf32>, vector<8x32xf32>, vector<1x8xf32> -> vector<1x8xf32>
    %11 = vector.broadcast %8 : vector<8x1xf32> to vector<8x8xf32>
    %12 = vector.broadcast %10 : vector<1x8xf32> to vector<8x8xf32>
    %13 = arith.addf %11, %12 : vector<8x8xf32>
    %cst_6 = arith.constant 2.000000e+00 : f32
    %14 = vector.broadcast %cst_6 : f32 to vector<8x8xf32>
    %15 = arith.mulf %14, %5 : vector<8x8xf32>
    %16 = arith.subf %13, %15 : vector<8x8xf32>
    %cst_7 = arith.constant 0.000000e+00 : f32
    %17 = vector.broadcast %cst_7 : f32 to vector<8x8xf32>
    %18 = arith.maximumf %16, %17 : vector<8x8xf32>
    %19 = math.sqrt %18 : vector<8x8xf32>
    %c0_8 = arith.constant 0 : index
    %c0_9 = arith.constant 0 : index
    %c0_10 = arith.constant 0 : index
    %20 = vector.load %arg3[%c0_8, %c0_9, %c0_10] : memref<1x1x8xf32, #tpu.memory_space<vmem>>, vector<1x1x8xf32>
    %21 = vector.shape_cast %20 : vector<1x1x8xf32> to vector<1x8xf32>
    %c0_11 = arith.constant 0 : index
    %c0_12 = arith.constant 0 : index
    %c0_13 = arith.constant 0 : index
    %22 = vector.load %arg6[%c0_11, %c0_12, %c0_13] : memref<1x32x192xf32, #tpu.memory_space<vmem>>, vector<1x32x192xf32>
    %23 = vector.shape_cast %22 : vector<1x32x192xf32> to vector<32x192xf32>
    %cst_14 = arith.constant dense<0.000000e+00> : vector<8x192xf32>
    %24 = tpu.matmul %4, %23, %cst_14 {dimension_numbers = #tpu.dot_dimension_numbers<[1], [0], [0], [1], [0, 0, 1, 1], [], []>} : vector<8x32xf32>, vector<32x192xf32>, vector<8x192xf32> -> vector<8x192xf32>
    %c0_15 = arith.constant 0 : index
    %c0_16 = arith.constant 0 : index
    %c0_17 = arith.constant 0 : index
    %25 = vector.load %arg7[%c0_15, %c0_16, %c0_17] : memref<1x1x192xf32, #tpu.memory_space<vmem>>, vector<1x1x192xf32>
    %26 = vector.shape_cast %25 : vector<1x1x192xf32> to vector<1x192xf32>
    %27 = vector.broadcast %26 : vector<1x192xf32> to vector<8x192xf32>
    %28 = arith.addf %24, %27 : vector<8x192xf32>
    %cst_18 = arith.constant 0.000000e+00 : f32
    %29 = vector.broadcast %cst_18 : f32 to vector<8x32xf32>
    %30 = vector.extract_strided_slice %28 {offsets = [0, 0], sizes = [8, 8], strides = [1, 1]} : vector<8x192xf32> to vector<8x8xf32>
    %31 = vector.extract_strided_slice %28 {offsets = [0, 32], sizes = [8, 8], strides = [1, 1]} : vector<8x192xf32> to vector<8x8xf32>
    %cst_19 = arith.constant dense<0.000000e+00> : vector<8x8xf32>
    %32 = tpu.matmul %30, %31, %cst_19 {dimension_numbers = #tpu.dot_dimension_numbers<[1], [1], [0], [0], [0, 0, 1, 0], [], []>} : vector<8x8xf32>, vector<8x8xf32>, vector<8x8xf32> -> vector<8x8xf32>
    %c0_20 = arith.constant 0 : index
    %c0_21 = arith.constant 0 : index
    %c0_22 = arith.constant 0 : index
    %c0_23 = arith.constant 0 : index
    %33 = vector.load %arg5[%c0_20, %c0_21, %c0_22, %c0_23] : memref<1x4x8x8xf32, #tpu.memory_space<vmem>>, vector<1x1x8x8xf32>
    %34 = vector.shape_cast %33 : vector<1x1x8x8xf32> to vector<8x8xf32>
    %35 = arith.addf %32, %34 : vector<8x8xf32>
    %36 = vector.broadcast %21 : vector<1x8xf32> to vector<8x8xf32>
    %37 = arith.addf %35, %36 : vector<8x8xf32>
    %38 = arith.index_cast %arg1 : i32 to index
    %c0_24 = arith.constant 0 : index
    %39 = memref.load %arg9[%38, %c0_24] : memref<3x12xf32, #tpu.memory_space<smem>>
    %40 = vector.broadcast %39 : f32 to vector<8x8xf32>
    %41 = arith.mulf %19, %40 : vector<8x8xf32>
    %42 = arith.addf %37, %41 : vector<8x8xf32>
    %43 = arith.index_cast %arg1 : i32 to index
    %c4 = arith.constant 4 : index
    %44 = memref.load %arg9[%43, %c4] : memref<3x12xf32, #tpu.memory_space<smem>>
    %45 = vector.broadcast %44 : f32 to vector<8x8xf32>
    %46 = arith.mulf %18, %45 : vector<8x8xf32>
    %47 = arith.addf %42, %46 : vector<8x8xf32>
    %48 = arith.index_cast %arg1 : i32 to index
    %c8 = arith.constant 8 : index
    %49 = memref.load %arg9[%48, %c8] : memref<3x12xf32, #tpu.memory_space<smem>>
    %50 = vector.broadcast %49 : f32 to vector<8x8xf32>
    %51 = arith.addf %47, %50 : vector<8x8xf32>
    %cst_25 = arith.constant dense<0xFF800000> : vector<8xf32>
    %52 = vector.multi_reduction <maximumf>, %51, %cst_25 [1] : vector<8x8xf32> to vector<8xf32>
    %53 = vector.shape_cast %52 : vector<8xf32> to vector<8x1xf32>
    %54 = vector.broadcast %53 : vector<8x1xf32> to vector<8x8xf32>
    %55 = arith.subf %51, %54 : vector<8x8xf32>
    %56 = math.exp %55 : vector<8x8xf32>
    %cst_26 = arith.constant dense<0.000000e+00> : vector<8xf32>
    %57 = vector.multi_reduction <add>, %56, %cst_26 [1] : vector<8x8xf32> to vector<8xf32>
    %58 = vector.shape_cast %57 : vector<8xf32> to vector<8x1xf32>
    %59 = tpu.reciprocal %58 {approx = true} : vector<8x1xf32> -> vector<8x1xf32>
    %60 = vector.broadcast %59 : vector<8x1xf32> to vector<8x8xf32>
    %61 = arith.mulf %56, %60 : vector<8x8xf32>
    %62 = vector.extract_strided_slice %28 {offsets = [0, 64], sizes = [8, 32], strides = [1, 1]} : vector<8x192xf32> to vector<8x32xf32>
    %cst_27 = arith.constant dense<0.000000e+00> : vector<8x32xf32>
    %63 = tpu.matmul %61, %62, %cst_27 {dimension_numbers = #tpu.dot_dimension_numbers<[1], [0], [0], [1], [0, 0, 1, 1], [], []>} : vector<8x8xf32>, vector<8x32xf32>, vector<8x32xf32> -> vector<8x32xf32>
    %64 = arith.addf %29, %63 : vector<8x32xf32>
    %65 = vector.extract_strided_slice %28 {offsets = [0, 8], sizes = [8, 8], strides = [1, 1]} : vector<8x192xf32> to vector<8x8xf32>
    %66 = vector.extract_strided_slice %28 {offsets = [0, 40], sizes = [8, 8], strides = [1, 1]} : vector<8x192xf32> to vector<8x8xf32>
    %cst_28 = arith.constant dense<0.000000e+00> : vector<8x8xf32>
    %67 = tpu.matmul %65, %66, %cst_28 {dimension_numbers = #tpu.dot_dimension_numbers<[1], [1], [0], [0], [0, 0, 1, 0], [], []>} : vector<8x8xf32>, vector<8x8xf32>, vector<8x8xf32> -> vector<8x8xf32>
    %c0_29 = arith.constant 0 : index
    %c1 = arith.constant 1 : index
    %c0_30 = arith.constant 0 : index
    %c0_31 = arith.constant 0 : index
    %68 = vector.load %arg5[%c0_29, %c1, %c0_30, %c0_31] : memref<1x4x8x8xf32, #tpu.memory_space<vmem>>, vector<1x1x8x8xf32>
    %69 = vector.shape_cast %68 : vector<1x1x8x8xf32> to vector<8x8xf32>
    %70 = arith.addf %67, %69 : vector<8x8xf32>
    %71 = vector.broadcast %21 : vector<1x8xf32> to vector<8x8xf32>
    %72 = arith.addf %70, %71 : vector<8x8xf32>
    %73 = arith.index_cast %arg1 : i32 to index
    %c1_32 = arith.constant 1 : index
    %74 = memref.load %arg9[%73, %c1_32] : memref<3x12xf32, #tpu.memory_space<smem>>
    %75 = vector.broadcast %74 : f32 to vector<8x8xf32>
    %76 = arith.mulf %19, %75 : vector<8x8xf32>
    %77 = arith.addf %72, %76 : vector<8x8xf32>
    %78 = arith.index_cast %arg1 : i32 to index
    %c5 = arith.constant 5 : index
    %79 = memref.load %arg9[%78, %c5] : memref<3x12xf32, #tpu.memory_space<smem>>
    %80 = vector.broadcast %79 : f32 to vector<8x8xf32>
    %81 = arith.mulf %18, %80 : vector<8x8xf32>
    %82 = arith.addf %77, %81 : vector<8x8xf32>
    %83 = arith.index_cast %arg1 : i32 to index
    %c9 = arith.constant 9 : index
    %84 = memref.load %arg9[%83, %c9] : memref<3x12xf32, #tpu.memory_space<smem>>
    %85 = vector.broadcast %84 : f32 to vector<8x8xf32>
    %86 = arith.addf %82, %85 : vector<8x8xf32>
    %cst_33 = arith.constant dense<0xFF800000> : vector<8xf32>
    %87 = vector.multi_reduction <maximumf>, %86, %cst_33 [1] : vector<8x8xf32> to vector<8xf32>
    %88 = vector.shape_cast %87 : vector<8xf32> to vector<8x1xf32>
    %89 = vector.broadcast %88 : vector<8x1xf32> to vector<8x8xf32>
    %90 = arith.subf %86, %89 : vector<8x8xf32>
    %91 = math.exp %90 : vector<8x8xf32>
    %cst_34 = arith.constant dense<0.000000e+00> : vector<8xf32>
    %92 = vector.multi_reduction <add>, %91, %cst_34 [1] : vector<8x8xf32> to vector<8xf32>
    %93 = vector.shape_cast %92 : vector<8xf32> to vector<8x1xf32>
    %94 = tpu.reciprocal %93 {approx = true} : vector<8x1xf32> -> vector<8x1xf32>
    %95 = vector.broadcast %94 : vector<8x1xf32> to vector<8x8xf32>
    %96 = arith.mulf %91, %95 : vector<8x8xf32>
    %97 = vector.extract_strided_slice %28 {offsets = [0, 96], sizes = [8, 32], strides = [1, 1]} : vector<8x192xf32> to vector<8x32xf32>
    %cst_35 = arith.constant dense<0.000000e+00> : vector<8x32xf32>
    %98 = tpu.matmul %96, %97, %cst_35 {dimension_numbers = #tpu.dot_dimension_numbers<[1], [0], [0], [1], [0, 0, 1, 1], [], []>} : vector<8x8xf32>, vector<8x32xf32>, vector<8x32xf32> -> vector<8x32xf32>
    %99 = arith.addf %64, %98 : vector<8x32xf32>
    %100 = vector.extract_strided_slice %28 {offsets = [0, 16], sizes = [8, 8], strides = [1, 1]} : vector<8x192xf32> to vector<8x8xf32>
    %101 = vector.extract_strided_slice %28 {offsets = [0, 48], sizes = [8, 8], strides = [1, 1]} : vector<8x192xf32> to vector<8x8xf32>
    %cst_36 = arith.constant dense<0.000000e+00> : vector<8x8xf32>
    %102 = tpu.matmul %100, %101, %cst_36 {dimension_numbers = #tpu.dot_dimension_numbers<[1], [1], [0], [0], [0, 0, 1, 0], [], []>} : vector<8x8xf32>, vector<8x8xf32>, vector<8x8xf32> -> vector<8x8xf32>
    %c0_37 = arith.constant 0 : index
    %c2 = arith.constant 2 : index
    %c0_38 = arith.constant 0 : index
    %c0_39 = arith.constant 0 : index
    %103 = vector.load %arg5[%c0_37, %c2, %c0_38, %c0_39] : memref<1x4x8x8xf32, #tpu.memory_space<vmem>>, vector<1x1x8x8xf32>
    %104 = vector.shape_cast %103 : vector<1x1x8x8xf32> to vector<8x8xf32>
    %105 = arith.addf %102, %104 : vector<8x8xf32>
    %106 = vector.broadcast %21 : vector<1x8xf32> to vector<8x8xf32>
    %107 = arith.addf %105, %106 : vector<8x8xf32>
    %108 = arith.index_cast %arg1 : i32 to index
    %c2_40 = arith.constant 2 : index
    %109 = memref.load %arg9[%108, %c2_40] : memref<3x12xf32, #tpu.memory_space<smem>>
    %110 = vector.broadcast %109 : f32 to vector<8x8xf32>
    %111 = arith.mulf %19, %110 : vector<8x8xf32>
    %112 = arith.addf %107, %111 : vector<8x8xf32>
    %113 = arith.index_cast %arg1 : i32 to index
    %c6 = arith.constant 6 : index
    %114 = memref.load %arg9[%113, %c6] : memref<3x12xf32, #tpu.memory_space<smem>>
    %115 = vector.broadcast %114 : f32 to vector<8x8xf32>
    %116 = arith.mulf %18, %115 : vector<8x8xf32>
    %117 = arith.addf %112, %116 : vector<8x8xf32>
    %118 = arith.index_cast %arg1 : i32 to index
    %c10 = arith.constant 10 : index
    %119 = memref.load %arg9[%118, %c10] : memref<3x12xf32, #tpu.memory_space<smem>>
    %120 = vector.broadcast %119 : f32 to vector<8x8xf32>
    %121 = arith.addf %117, %120 : vector<8x8xf32>
    %cst_41 = arith.constant dense<0xFF800000> : vector<8xf32>
    %122 = vector.multi_reduction <maximumf>, %121, %cst_41 [1] : vector<8x8xf32> to vector<8xf32>
    %123 = vector.shape_cast %122 : vector<8xf32> to vector<8x1xf32>
    %124 = vector.broadcast %123 : vector<8x1xf32> to vector<8x8xf32>
    %125 = arith.subf %121, %124 : vector<8x8xf32>
    %126 = math.exp %125 : vector<8x8xf32>
    %cst_42 = arith.constant dense<0.000000e+00> : vector<8xf32>
    %127 = vector.multi_reduction <add>, %126, %cst_42 [1] : vector<8x8xf32> to vector<8xf32>
    %128 = vector.shape_cast %127 : vector<8xf32> to vector<8x1xf32>
    %129 = tpu.reciprocal %128 {approx = true} : vector<8x1xf32> -> vector<8x1xf32>
    %130 = vector.broadcast %129 : vector<8x1xf32> to vector<8x8xf32>
    %131 = arith.mulf %126, %130 : vector<8x8xf32>
    %132 = vector.extract_strided_slice %28 {offsets = [0, 128], sizes = [8, 32], strides = [1, 1]} : vector<8x192xf32> to vector<8x32xf32>
    %cst_43 = arith.constant dense<0.000000e+00> : vector<8x32xf32>
    %133 = tpu.matmul %131, %132, %cst_43 {dimension_numbers = #tpu.dot_dimension_numbers<[1], [0], [0], [1], [0, 0, 1, 1], [], []>} : vector<8x8xf32>, vector<8x32xf32>, vector<8x32xf32> -> vector<8x32xf32>
    %134 = arith.addf %99, %133 : vector<8x32xf32>
    %135 = vector.extract_strided_slice %28 {offsets = [0, 24], sizes = [8, 8], strides = [1, 1]} : vector<8x192xf32> to vector<8x8xf32>
    %136 = vector.extract_strided_slice %28 {offsets = [0, 56], sizes = [8, 8], strides = [1, 1]} : vector<8x192xf32> to vector<8x8xf32>
    %cst_44 = arith.constant dense<0.000000e+00> : vector<8x8xf32>
    %137 = tpu.matmul %135, %136, %cst_44 {dimension_numbers = #tpu.dot_dimension_numbers<[1], [1], [0], [0], [0, 0, 1, 0], [], []>} : vector<8x8xf32>, vector<8x8xf32>, vector<8x8xf32> -> vector<8x8xf32>
    %c0_45 = arith.constant 0 : index
    %c3 = arith.constant 3 : index
    %c0_46 = arith.constant 0 : index
    %c0_47 = arith.constant 0 : index
    %138 = vector.load %arg5[%c0_45, %c3, %c0_46, %c0_47] : memref<1x4x8x8xf32, #tpu.memory_space<vmem>>, vector<1x1x8x8xf32>
    %139 = vector.shape_cast %138 : vector<1x1x8x8xf32> to vector<8x8xf32>
    %140 = arith.addf %137, %139 : vector<8x8xf32>
    %141 = vector.broadcast %21 : vector<1x8xf32> to vector<8x8xf32>
    %142 = arith.addf %140, %141 : vector<8x8xf32>
    %143 = arith.index_cast %arg1 : i32 to index
    %c3_48 = arith.constant 3 : index
    %144 = memref.load %arg9[%143, %c3_48] : memref<3x12xf32, #tpu.memory_space<smem>>
    %145 = vector.broadcast %144 : f32 to vector<8x8xf32>
    %146 = arith.mulf %19, %145 : vector<8x8xf32>
    %147 = arith.addf %142, %146 : vector<8x8xf32>
    %148 = arith.index_cast %arg1 : i32 to index
    %c7 = arith.constant 7 : index
    %149 = memref.load %arg9[%148, %c7] : memref<3x12xf32, #tpu.memory_space<smem>>
    %150 = vector.broadcast %149 : f32 to vector<8x8xf32>
    %151 = arith.mulf %18, %150 : vector<8x8xf32>
    %152 = arith.addf %147, %151 : vector<8x8xf32>
    %153 = arith.index_cast %arg1 : i32 to index
    %c11 = arith.constant 11 : index
    %154 = memref.load %arg9[%153, %c11] : memref<3x12xf32, #tpu.memory_space<smem>>
    %155 = vector.broadcast %154 : f32 to vector<8x8xf32>
    %156 = arith.addf %152, %155 : vector<8x8xf32>
    %cst_49 = arith.constant dense<0xFF800000> : vector<8xf32>
    %157 = vector.multi_reduction <maximumf>, %156, %cst_49 [1] : vector<8x8xf32> to vector<8xf32>
    %158 = vector.shape_cast %157 : vector<8xf32> to vector<8x1xf32>
    %159 = vector.broadcast %158 : vector<8x1xf32> to vector<8x8xf32>
    %160 = arith.subf %156, %159 : vector<8x8xf32>
    %161 = math.exp %160 : vector<8x8xf32>
    %cst_50 = arith.constant dense<0.000000e+00> : vector<8xf32>
    %162 = vector.multi_reduction <add>, %161, %cst_50 [1] : vector<8x8xf32> to vector<8xf32>
    %163 = vector.shape_cast %162 : vector<8xf32> to vector<8x1xf32>
    %164 = tpu.reciprocal %163 {approx = true} : vector<8x1xf32> -> vector<8x1xf32>
    %165 = vector.broadcast %164 : vector<8x1xf32> to vector<8x8xf32>
    %166 = arith.mulf %161, %165 : vector<8x8xf32>
    %167 = vector.extract_strided_slice %28 {offsets = [0, 160], sizes = [8, 32], strides = [1, 1]} : vector<8x192xf32> to vector<8x32xf32>
    %cst_51 = arith.constant dense<0.000000e+00> : vector<8x32xf32>
    %168 = tpu.matmul %166, %167, %cst_51 {dimension_numbers = #tpu.dot_dimension_numbers<[1], [0], [0], [1], [0, 0, 1, 1], [], []>} : vector<8x8xf32>, vector<8x32xf32>, vector<8x32xf32> -> vector<8x32xf32>
    %169 = arith.addf %134, %168 : vector<8x32xf32>
    %c0_52 = arith.constant 0 : index
    %c0_53 = arith.constant 0 : index
    %c0_54 = arith.constant 0 : index
    %170 = vector.load %arg8[%c0_52, %c0_53, %c0_54] : memref<1x1x32xf32, #tpu.memory_space<vmem>>, vector<1x1x32xf32>
    %171 = vector.shape_cast %170 : vector<1x1x32xf32> to vector<1x32xf32>
    %172 = vector.broadcast %171 : vector<1x32xf32> to vector<8x32xf32>
    %173 = arith.addf %169, %172 : vector<8x32xf32>
    %174 = arith.addf %4, %173 : vector<8x32xf32>
    %c0_55 = arith.constant 0 : index
    %c0_56 = arith.constant 0 : index
    %c0_57 = arith.constant 0 : index
    %175 = vector.load %arg14[%c0_55, %c0_56, %c0_57] : memref<1x1x32xf32, #tpu.memory_space<vmem>>, vector<1x1x32xf32>
    %176 = vector.shape_cast %175 : vector<1x1x32xf32> to vector<1x32xf32>
    %c0_58 = arith.constant 0 : index
    %c0_59 = arith.constant 0 : index
    %c0_60 = arith.constant 0 : index
    %177 = vector.load %arg15[%c0_58, %c0_59, %c0_60] : memref<1x1x32xf32, #tpu.memory_space<vmem>>, vector<1x1x32xf32>
    %178 = vector.shape_cast %177 : vector<1x1x32xf32> to vector<1x32xf32>
    %cst_61 = arith.constant dense<0.000000e+00> : vector<8xf32>
    %179 = vector.multi_reduction <add>, %174, %cst_61 [1] : vector<8x32xf32> to vector<8xf32>
    %180 = vector.shape_cast %179 : vector<8xf32> to vector<8x1xf32>
    %cst_62 = arith.constant 3.200000e+01 : f32
    %181 = vector.broadcast %cst_62 : f32 to vector<8x1xf32>
    %182 = arith.divf %180, %181 : vector<8x1xf32>
    %183 = vector.broadcast %182 : vector<8x1xf32> to vector<8x32xf32>
    %184 = arith.subf %174, %183 : vector<8x32xf32>
    %185 = arith.mulf %184, %184 : vector<8x32xf32>
    %cst_63 = arith.constant dense<0.000000e+00> : vector<8xf32>
    %186 = vector.multi_reduction <add>, %185, %cst_63 [1] : vector<8x32xf32> to vector<8xf32>
    %187 = vector.shape_cast %186 : vector<8xf32> to vector<8x1xf32>
    %cst_64 = arith.constant 3.200000e+01 : f32
    %188 = vector.broadcast %cst_64 : f32 to vector<8x1xf32>
    %189 = arith.divf %187, %188 : vector<8x1xf32>
    %cst_65 = arith.constant 9.99999974E-6 : f32
    %190 = vector.broadcast %cst_65 : f32 to vector<8x1xf32>
    %191 = arith.addf %189, %190 : vector<8x1xf32>
    %192 = math.rsqrt %191 : vector<8x1xf32>
    %193 = vector.broadcast %192 : vector<8x1xf32> to vector<8x32xf32>
    %194 = arith.mulf %184, %193 : vector<8x32xf32>
    %195 = vector.broadcast %176 : vector<1x32xf32> to vector<8x32xf32>
    %196 = arith.mulf %194, %195 : vector<8x32xf32>
    %197 = vector.broadcast %178 : vector<1x32xf32> to vector<8x32xf32>
    %198 = arith.addf %196, %197 : vector<8x32xf32>
    %c0_66 = arith.constant 0 : index
    %c0_67 = arith.constant 0 : index
    %c0_68 = arith.constant 0 : index
    %199 = vector.load %arg10[%c0_66, %c0_67, %c0_68] : memref<1x32x128xf32, #tpu.memory_space<vmem>>, vector<1x32x128xf32>
    %200 = vector.shape_cast %199 : vector<1x32x128xf32> to vector<32x128xf32>
    %cst_69 = arith.constant dense<0.000000e+00> : vector<8x128xf32>
    %201 = tpu.matmul %198, %200, %cst_69 {dimension_numbers = #tpu.dot_dimension_numbers<[1], [0], [0], [1], [0, 0, 1, 1], [], []>} : vector<8x32xf32>, vector<32x128xf32>, vector<8x128xf32> -> vector<8x128xf32>
    %c0_70 = arith.constant 0 : index
    %c0_71 = arith.constant 0 : index
    %c0_72 = arith.constant 0 : index
    %202 = vector.load %arg11[%c0_70, %c0_71, %c0_72] : memref<1x1x128xf32, #tpu.memory_space<vmem>>, vector<1x1x128xf32>
    %203 = vector.shape_cast %202 : vector<1x1x128xf32> to vector<1x128xf32>
    %204 = vector.broadcast %203 : vector<1x128xf32> to vector<8x128xf32>
    %205 = arith.addf %201, %204 : vector<8x128xf32>
    %cst_73 = arith.constant 0.000000e+00 : f32
    %206 = vector.broadcast %cst_73 : f32 to vector<8x128xf32>
    %207 = arith.maximumf %205, %206 : vector<8x128xf32>
    %c0_74 = arith.constant 0 : index
    %c0_75 = arith.constant 0 : index
    %c0_76 = arith.constant 0 : index
    %208 = vector.load %arg12[%c0_74, %c0_75, %c0_76] : memref<1x128x32xf32, #tpu.memory_space<vmem>>, vector<1x128x32xf32>
    %209 = vector.shape_cast %208 : vector<1x128x32xf32> to vector<128x32xf32>
    %cst_77 = arith.constant dense<0.000000e+00> : vector<8x32xf32>
    %210 = tpu.matmul %207, %209, %cst_77 {dimension_numbers = #tpu.dot_dimension_numbers<[1], [0], [0], [1], [0, 0, 1, 1], [], []>} : vector<8x128xf32>, vector<128x32xf32>, vector<8x32xf32> -> vector<8x32xf32>
    %c0_78 = arith.constant 0 : index
    %c0_79 = arith.constant 0 : index
    %c0_80 = arith.constant 0 : index
    %211 = vector.load %arg13[%c0_78, %c0_79, %c0_80] : memref<1x1x32xf32, #tpu.memory_space<vmem>>, vector<1x1x32xf32>
    %212 = vector.shape_cast %211 : vector<1x1x32xf32> to vector<1x32xf32>
    %213 = vector.broadcast %212 : vector<1x32xf32> to vector<8x32xf32>
    %214 = arith.addf %210, %213 : vector<8x32xf32>
    %c0_81 = arith.constant 0 : index
    %c0_82 = arith.constant 0 : index
    %c0_83 = arith.constant 0 : index
    %215 = vector.load %arg4[%c0_81, %c0_82, %c0_83] : memref<1x8x1xf32, #tpu.memory_space<vmem>>, vector<1x8x1xf32>
    %216 = vector.shape_cast %215 : vector<1x8x1xf32> to vector<8x1xf32>
    %217 = vector.broadcast %216 : vector<8x1xf32> to vector<8x32xf32>
    %218 = arith.mulf %214, %217 : vector<8x32xf32>
    %219 = arith.addf %198, %218 : vector<8x32xf32>
    %c0_84 = arith.constant 0 : index
    %c0_85 = arith.constant 0 : index
    %c0_86 = arith.constant 0 : index
    %220 = vector.load %arg16[%c0_84, %c0_85, %c0_86] : memref<1x1x32xf32, #tpu.memory_space<vmem>>, vector<1x1x32xf32>
    %221 = vector.shape_cast %220 : vector<1x1x32xf32> to vector<1x32xf32>
    %c0_87 = arith.constant 0 : index
    %c0_88 = arith.constant 0 : index
    %c0_89 = arith.constant 0 : index
    %222 = vector.load %arg17[%c0_87, %c0_88, %c0_89] : memref<1x1x32xf32, #tpu.memory_space<vmem>>, vector<1x1x32xf32>
    %223 = vector.shape_cast %222 : vector<1x1x32xf32> to vector<1x32xf32>
    %cst_90 = arith.constant dense<0.000000e+00> : vector<8xf32>
    %224 = vector.multi_reduction <add>, %219, %cst_90 [1] : vector<8x32xf32> to vector<8xf32>
    %225 = vector.shape_cast %224 : vector<8xf32> to vector<8x1xf32>
    %cst_91 = arith.constant 3.200000e+01 : f32
    %226 = vector.broadcast %cst_91 : f32 to vector<8x1xf32>
    %227 = arith.divf %225, %226 : vector<8x1xf32>
    %228 = vector.broadcast %227 : vector<8x1xf32> to vector<8x32xf32>
    %229 = arith.subf %219, %228 : vector<8x32xf32>
    %230 = arith.mulf %229, %229 : vector<8x32xf32>
    %cst_92 = arith.constant dense<0.000000e+00> : vector<8xf32>
    %231 = vector.multi_reduction <add>, %230, %cst_92 [1] : vector<8x32xf32> to vector<8xf32>
    %232 = vector.shape_cast %231 : vector<8xf32> to vector<8x1xf32>
    %cst_93 = arith.constant 3.200000e+01 : f32
    %233 = vector.broadcast %cst_93 : f32 to vector<8x1xf32>
    %234 = arith.divf %232, %233 : vector<8x1xf32>
    %cst_94 = arith.constant 9.99999974E-6 : f32
    %235 = vector.broadcast %cst_94 : f32 to vector<8x1xf32>
    %236 = arith.addf %234, %235 : vector<8x1xf32>
    %237 = math.rsqrt %236 : vector<8x1xf32>
    %238 = vector.broadcast %237 : vector<8x1xf32> to vector<8x32xf32>
    %239 = arith.mulf %229, %238 : vector<8x32xf32>
    %240 = vector.broadcast %221 : vector<1x32xf32> to vector<8x32xf32>
    %241 = arith.mulf %239, %240 : vector<8x32xf32>
    %242 = vector.broadcast %223 : vector<1x32xf32> to vector<8x32xf32>
    %243 = arith.addf %241, %242 : vector<8x32xf32>
    %c0_95 = arith.constant 0 : index
    %c0_96 = arith.constant 0 : index
    %c0_97 = arith.constant 0 : index
    %244 = vector.load %arg18[%c0_95, %c0_96, %c0_97] : memref<1x8x32xf32, #tpu.memory_space<vmem>>, vector<1x8x32xf32>
    %245 = vector.shape_cast %244 : vector<1x8x32xf32> to vector<8x32xf32>
    %246 = vector.shape_cast %243 : vector<8x32xf32> to vector<1x8x32xf32>
    tpu.vector_store %arg18[%c0_95, %c0_96, %c0_97], %246 {strides = array<i32>} : memref<1x8x32xf32, #tpu.memory_space<vmem>>, vector<1x8x32xf32>,
    return
  }
  func.func @transform_0(%arg0: i32, %arg1: i32) -> (i32, i32, i32) {
    %c0_i32 = arith.constant 0 : i32
    %c0_i32_0 = arith.constant 0 : i32
    %c0_i32_1 = arith.constant 0 : i32
    return %arg0, %c0_i32, %c0_i32_0 : i32, i32, i32
  }
  func.func @transform_1(%arg0: i32, %arg1: i32) -> (i32, i32, i32) {
    %c0_i32 = arith.constant 0 : i32
    %c0_i32_0 = arith.constant 0 : i32
    %c0_i32_1 = arith.constant 0 : i32
    return %arg0, %c0_i32, %c0_i32_0 : i32, i32, i32
  }
  func.func @transform_2(%arg0: i32, %arg1: i32) -> (i32, i32, i32) {
    %c0_i32 = arith.constant 0 : i32
    %c0_i32_0 = arith.constant 0 : i32
    %c0_i32_1 = arith.constant 0 : i32
    return %arg0, %c0_i32, %c0_i32_0 : i32, i32, i32
  }
  func.func @transform_3(%arg0: i32, %arg1: i32) -> (i32, i32, i32, i32) {
    %c0_i32 = arith.constant 0 : i32
    %c0_i32_0 = arith.constant 0 : i32
    %c0_i32_1 = arith.constant 0 : i32
    %c0_i32_2 = arith.constant 0 : i32
    return %arg1, %c0_i32, %c0_i32_0, %c0_i32_1 : i32, i32, i32, i32
  }
  func.func @transform_4(%arg0: i32, %arg1: i32) -> (i32, i32, i32) {
    %c0_i32 = arith.constant 0 : i32
    %c0_i32_0 = arith.constant 0 : i32
    %c0_i32_1 = arith.constant 0 : i32
    return %arg1, %c0_i32, %c0_i32_0 : i32, i32, i32
  }
  func.func @transform_5(%arg0: i32, %arg1: i32) -> (i32, i32, i32) {
    %c0_i32 = arith.constant 0 : i32
    %c0_i32_0 = arith.constant 0 : i32
    %c0_i32_1 = arith.constant 0 : i32
    return %arg1, %c0_i32, %c0_i32_0 : i32, i32, i32
  }
  func.func @transform_6(%arg0: i32, %arg1: i32) -> (i32, i32, i32) {
    %c0_i32 = arith.constant 0 : i32
    %c0_i32_0 = arith.constant 0 : i32
    %c0_i32_1 = arith.constant 0 : i32
    return %arg1, %c0_i32, %c0_i32_0 : i32, i32, i32
  }
  func.func @transform_7(%arg0: i32, %arg1: i32) -> (i32, i32) {
    %c0_i32 = arith.constant 0 : i32
    %c0_i32_0 = arith.constant 0 : i32
    %c0_i32_1 = arith.constant 0 : i32
    return %c0_i32, %c0_i32_0 : i32, i32
  }
  func.func @transform_8(%arg0: i32, %arg1: i32) -> (i32, i32, i32) {
    %c0_i32 = arith.constant 0 : i32
    %c0_i32_0 = arith.constant 0 : i32
    %c0_i32_1 = arith.constant 0 : i32
    return %arg1, %c0_i32, %c0_i32_0 : i32, i32, i32
  }
  func.func @transform_9(%arg0: i32, %arg1: i32) -> (i32, i32, i32) {
    %c0_i32 = arith.constant 0 : i32
    %c0_i32_0 = arith.constant 0 : i32
    %c0_i32_1 = arith.constant 0 : i32
    return %arg1, %c0_i32, %c0_i32_0 : i32, i32, i32
  }
  func.func @transform_10(%arg0: i32, %arg1: i32) -> (i32, i32, i32) {
    %c0_i32 = arith.constant 0 : i32
    %c0_i32_0 = arith.constant 0 : i32
    %c0_i32_1 = arith.constant 0 : i32
    return %arg1, %c0_i32, %c0_i32_0 : i32, i32, i32
  }
  func.func @transform_11(%arg0: i32, %arg1: i32) -> (i32, i32, i32) {
    %c0_i32 = arith.constant 0 : i32
    %c0_i32_0 = arith.constant 0 : i32
    %c0_i32_1 = arith.constant 0 : i32
    return %arg1, %c0_i32, %c0_i32_0 : i32, i32, i32
  }
  func.func @transform_12(%arg0: i32, %arg1: i32) -> (i32, i32, i32) {
    %c0_i32 = arith.constant 0 : i32
    %c0_i32_0 = arith.constant 0 : i32
    %c0_i32_1 = arith.constant 0 : i32
    return %arg1, %c0_i32, %c0_i32_0 : i32, i32, i32
  }
  func.func @transform_13(%arg0: i32, %arg1: i32) -> (i32, i32, i32) {
    %c0_i32 = arith.constant 0 : i32
    %c0_i32_0 = arith.constant 0 : i32
    %c0_i32_1 = arith.constant 0 : i32
    return %arg1, %c0_i32, %c0_i32_0 : i32, i32, i32
  }
  func.func @transform_14(%arg0: i32, %arg1: i32) -> (i32, i32, i32) {
    %c0_i32 = arith.constant 0 : i32
    %c0_i32_0 = arith.constant 0 : i32
    %c0_i32_1 = arith.constant 0 : i32
    return %arg1, %c0_i32, %c0_i32_0 : i32, i32, i32
  }
  func.func @transform_15(%arg0: i32, %arg1: i32) -> (i32, i32, i32) {
    %c0_i32 = arith.constant 0 : i32
    %c0_i32_0 = arith.constant 0 : i32
    %c0_i32_1 = arith.constant 0 : i32
    return %arg1, %c0_i32, %c0_i32_0 : i32, i32, i32
  }
  func.func @transform_16(%arg0: i32, %arg1: i32) -> (i32, i32, i32) {
    %c0_i32 = arith.constant 0 : i32
    %c0_i32_0 = arith.constant 0 : i32
    %c0_i32_1 = arith.constant 0 : i32
    return %arg0, %c0_i32, %c0_i32_0 : i32, i32, i32
  }
}

</mosaic_0001>

<bundles_post_ra>
// kernel: se3_forward.1
= control target key start
LH: loop header
LB: loop body
LE: loop exit
PB: predicated region body
PF: predicated region fallthrough
CT: control target
= control target key end

     0   :  { %s3089_s0 = inlined_call_operand.vmem [shape: f32[2,8,32], index: 0, kind: input, shape index: {}]   ;;  %s3090_s1 = inlined_call_operand.vmem [shape: f32[2,1,8], index: 1, kind: input, shape index: {}]   ;;  %s3091_s2 = inlined_call_operand.vmem [shape: f32[2,8,1], index: 2, kind: input, shape index: {}]   ;;  %s3092_s3 = inlined_call_operand.vmem [shape: f32[3,4,8,8], index: 3, kind: input, shape index: {}]   ;;  %s3093_s4 = inlined_call_operand.vmem [shape: f32[3,32,192], index: 4, kind: input, shape index: {}]   ;;  %s3094_s5 = inlined_call_operand.vmem [shape: f32[3,1,192], index: 5, kind: input, shape index: {}]   ;;  %s3095_s6 = inlined_call_operand.vmem [shape: f32[3,1,32], index: 6, kind: input, shape index: {}]   ;;  %s3096_s7 = inlined_call_operand.vmem [shape: f32[3,12], index: 7, kind: input, shape index: {}]   ;;  %s3097_s8 = inlined_call_operand.vmem [shape: f32[3,32,128], index: 8, kind: input, shape index: {}]   ;;  %s3098_s9 = inlined_call_operand.vmem [shape: f32[3,1,128], index: 9, kind: input, shape index: {}]   ;;  %s3099_s10 = inlined_call_operand.vmem [shape: f32[3,128,32], index: 10, kind: input, shape index: {}]   ;;  %s3100_s11 = inlined_call_operand.vmem [shape: f32[3,1,32], index: 11, kind: input, shape index: {}]   ;;  %s3101_s12 = inlined_call_operand.vmem [shape: f32[3,1,32], index: 12, kind: input, shape index: {}]   ;;  %s3102_s13 = inlined_call_operand.vmem [shape: f32[3,1,32], index: 13, kind: input, shape index: {}]   ;;  %s3103_s14 = inlined_call_operand.vmem [shape: f32[3,1,32], index: 14, kind: input, shape index: {}]   ;;  %s3104_s15 = inlined_call_operand.vmem [shape: f32[3,1,32], index: 15, kind: input, shape index: {}]   ;;  %s3105_s16 = inlined_call_operand.vmem [shape: f32[2,8,32], index: 16, kind: output, shape index: {}]  }
   0x1   :  { %3111 = sst [smem:[#allocation12_spill]] %s3089_s0 }
   0x2   :  { %3112 = sst [smem:[#allocation13_spill]] %s3090_s1 }
   0x3   :  { %3113 = sst [smem:[#allocation14_spill]] %s3091_s2 }
   0x4   :  { %3114 = sst [smem:[#allocation15_spill]] %s3092_s3 }
   0x5   :  { %3115 = sst [smem:[#allocation16_spill]] %s3093_s4 }
   0x6   :  { %3116 = sst [smem:[#allocation17_spill]] %s3094_s5 }
   0x7   :  { %3117 = sst [smem:[#allocation18_spill]] %s3096_s7 }
   0x8   :  { %3118 = sst [smem:[#allocation19_spill]] %s3097_s8 }
   0x9   :  { %3119 = sst [smem:[#allocation20_spill]] %s3098_s9 }
   0xa   :  { %3120 = sst [smem:[#allocation21_spill]] %s3099_s10 }
   0xb   :  { %3121 = sst [smem:[#allocation22_spill]] %s3104_s15 }
   0xc   :  { %3122 = sst [smem:[#allocation23_spill]] %s3105_s16 }
   0xd   :  { %21 = vsyncpa [#allocation3], 0  ;;  %s2686_s21 = smov 0   ;;  %s2688_s22 = smov 0  }
   0xe   :  { %s2690_s23 = smov 0   ;;  %s2692_s24 = smov 0  }
   0xf   :  { %s2694_s25 = smov 0  }
  0x10 LB: > { %3123 = sst [smem:[#allocation5_spill]] %s2569_s21  ;;  %s2247_s26 = sadd.s32 4294967295, %s2585_s25   ;;  %s2585_s25 = sphi %s2694_s25, %s27_s25   ;;  %s2581_s24 = sphi %s2692_s24, %s3160_s24   ;;  %s2577_s23 = sphi %s2690_s23, %s3159_s23   ;;  %s2573_s22 = sphi %s2688_s22, %s3158_s22   ;;  %s2569_s21 = sphi %s2686_s21, %s3157_s21  }
  0x11   : > { %3124 = sst [smem:[#allocation6_spill]] %s2577_s23  ;;  %s36_s27 = sadd.s32 1, %s2577_s23 }
  0x12   : > { %3125 = sst [smem:[#allocation7_spill]] %s2581_s24  ;;  %p37_p0 = scmp.ge.s32.totalorder %s36_s27, 3 }
  0x13   : > { %3126 = sst [smem:[#allocation8_spill]] %s2585_s25  ;;  %s39_s28 = sadd.s32 1, %s2581_s24 }
  0x14   : > { %p2249_p1 = scmp.ge.s32.totalorder %s2585_s25, 1  ;;  %p481_p2 = scmp.lt.s32.totalorder %s2585_s25, 7 }
  0x15   : > { %s3162_s27 = smov (%p37_p0, %s36_s27), 0  ;;  %s3164_s28 = smov (!%p37_p0, %s39_s28), %s2581_s24 }
  0x16   : > { %3127 = sst [smem:[#allocation9_spill]] %s3162_s27  ;;  %p2719_p3 = pnand %p2249_p1, %p481_p2 }
  0x17   : > { %p41_p4 = scmp.ge.s32.totalorder %s3164_s28, 2  ;;  %p2723_p5 = scmp.eq.s32.totalorder %s2247_s26, 0 }
  0x18   : > { %p2445_p6 = pneg %p2719_p3  ;;  %s3130_s7 = sld [smem:[#allocation18_spill]] }
  0x19   : > { %s3166_s28 = smov (%p41_p4, %s3164_s28), 0 }
  0x1a   : > { %3131 = sst [smem:[#allocation10_spill]] %s3166_s28  ;;  %p2446_p7 = pnand %p2723_p5, %p2445_p6 }
  0x1c   : > { %p2530_p9 = pneg %p2446_p7 }
  0x1e   : > { %s494_s18 = sshll.u32 %s3130_s7, 4  ;;  %s495_s18 = int_to_ptr.vmem [resolvable:$true] %s494_s18 }
  0x1f   : > { %s2528_s19 = scalar_lea.vmem %s495_s18, 64  ;;  %p2536_p12 = scmp.lt.s32.totalorder %s495_s18, %s495_s18 }
  0x20   : > { %p2529_p8 = scmp.ne.s32.totalorder %s495_s18, %s2528_s19  ;;  %p2537_p13 = scmp.lt.s32.totalorder %s2528_s19, %s2528_s19 }
  0x22   : > { %p2531_p10 = pnand %p2530_p9, %p2529_p8  ;;  %p2538_p0 = por %p2537_p13, %p2536_p12 }
  0x24   : > { %p2532_p11 = pneg %p2531_p10 }
  0x26   : > { %p2539_p1 = pnand %p2538_p0, %p2532_p11 }
  0x28   : > { %2542 = shalt.err (!%p2539_p1)
}
  0x29   : > { %s2587_s20 = smov [#allocation2]   ;;  %608 = sbr.rel (%p2719_p3) target bundleno = 2666 (0xa6a), region = 84 }
  0x2a   : > { %2448 = dma.vmem_to_smem (!%p2446_p7), %s495_s18, 64, %s2587_s20, [#allocation3]  }
  0x2e   : > { %2564 = dma.done.wait (%p2723_p5), [#allocation3], 64  }
  0x2f   : > { %2566 = vsyncadd (%p2723_p5), [#allocation3], 4294967232 }
  0x30   : > { %614 = sfence }
  0x31   : > { %p709_p2 = scmp.lt.s32.totalorder %s2573_s22, 1  ;;  %p720_p4 = scmp.lt.s32.totalorder %s2569_s21, 2 }
  0x32   : > { %s3134_s20 = sld [smem:[#allocation12_spill]] }
  0x33   : > { %s3168_s22 = smov (!%p709_p2, %s2573_s22), 1  ;;  %s3136_s3 = sld [smem:[#allocation15_spill]] }
  0x34   : > { %3132 = sst [smem:[#allocation11_spill]] %s3168_s22  ;;  %s2751_s29 = sshll.u32 %s3168_s22, 3 }
  0x35   : > { %s2748_s26 = scalar_select %p720_p4, %s2569_s21, 2 }
  0x36   : > { %s3137_s4 = sld [smem:[#allocation16_spill]] }
  0x37   : > { %s2299_s23 = sshll.u32 %s2748_s26, 5  ;;  %s2300_s25 = sshll.u32 %s2748_s26, 6 }
  0x38   : > { %s712_s7 = scalar_lea.vmem %s3134_s20, %s2751_s29  ;;  %s2260_s19 = sshll.u32 %s2748_s26, 1 }
  0x39   : > { %s2770_s0 = scalar_lea.vmem %s3136_s3, %s2299_s23  ;;  %s3138_s5 = sld [smem:[#allocation17_spill]] }
  0x3a   : > { %s3139_s8 = sld [smem:[#allocation19_spill]]  ;;  %s755_s15 = scalar_lea.vmem %s3101_s12, %s2748_s26 }
  0x3b   : > { %s3141_s10 = sld [smem:[#allocation21_spill]]  ;;  %s761_s1 = scalar_lea.vmem %s3103_s14, %s2748_s26 }
  0x3c   : > { %s2775_s18 = scalar_lea.vmem %s3137_s4, %s2300_s25  ;;  %s2302_s25 = sshll.u32 %s2748_s26, 7 }
  0x3d   : > { %s3143_s27 = sld [smem:[#allocation23_spill]] }
  0x3e   : > { %s3144_s24 = sld [smem:[#allocation5_spill]] }
  0x3f   : > { %s2785_s2 = scalar_lea.vmem %s3138_s5, %s2260_s19  ;;  %s758_s5 = scalar_lea.vmem %s3102_s13, %s2748_s26 }
  0x40   : > { %s2790_s21 = scalar_lea.vmem %s3139_s8, %s2299_s23 }
  0x41   : > { %s2800_s22 = scalar_lea.vmem %s3141_s10, %s2302_s25  ;;  %s3142_s25 = sld [smem:[#allocation22_spill]] }
  0x43   : > { %s2826_s20 = scalar_lea.vmem %s3143_s27, %s2751_s29 }
  0x44   : > { %p2266_p3 = scmp.ne.s32.totalorder %s3144_s24, 0 }
  0x46   : > { %772 = sbr.rel (%p2266_p3) target bundleno = 77 (0x4d), region = 92 }
  0x47   : > { %s764_s17 = scalar_lea.vmem %s3142_s25, %s2748_s26 }
  0x4b   : > { %v773_v0 = vld [vmem:[%s712_s7] sm:$0xff]  ;;  %vm774_vm0 = vcmask 261120  }
  0x4c   : > { %775 = vst.msk [vmem:[%s2826_s20] sm:$0xff] %vm774_vm0, %v773_v0 }
  0x4d PF: > { %vm777_vm1 = vcmask 261120   ;;  %v2588_v2 = vmov 0.0   ;;  %vm2589_vm2 = vmmov 0   ;;  %v954_v4 = vld [vmem:[%s2775_s18 + $0x38] sm:$0xff]  ;;  %v953_v5 = vld [vmem:[%s2775_s18 + $0x30] sm:$0xff]  ;;  %v952_v6 = vld [vmem:[%s2775_s18 + $0x28] sm:$0xff]  ;;  %v931_v13 = vlaneseq }
  0x4e   : > { %2345 = vmatprep.subr.mxu0 %v2588_v2  ;;  %2347 = vmatprep.mubr.msk.f32.mxu0 %vm2589_vm2, %v2588_v2  ;;  %v2590_v7 = vmov 1.0   ;;  %v951_v8 = vld [vmem:[%s2775_s18 + $0x20] sm:$0xff]  ;;  %v950_v9 = vld [vmem:[%s2775_s18 + $0x18] sm:$0xff]  ;;  %v949_v10 = vld [vmem:[%s2775_s18 + $0x10] sm:$0xff]  ;;  %s2591_s7 = smov 120   ;;  %s2592_s8 = smov 96  }
  0x4f   : > { %2370 = vmatprep.subr.mxu1 %v2588_v2  ;;  %2372 = vmatprep.mubr.msk.f32.mxu1 %vm2589_vm2, %v2588_v2  ;;  %v948_v11 = vld [vmem:[%s2775_s18 + $0x8] sm:$0xff]  ;;  %v947_v12 = vld [vmem:[%s2775_s18] sm:$0xff]  ;;  %v932_v14 = vshrl.u32 %v931_v13, 7  ;;  %s2593_s9 = smov 88   ;;  %s2595_s10 = smov 112   ;;  %vm1042_vm3 = vcmask 64512  }
  0x50   : > { %v955_v16 = vld [vmem:[%s2785_s2] sm:$0x3]  ;;  %s2594_s2 = smov 32   ;;  %s2596_s18 = smov 72   ;;  %v2276_v49 = vld [vmem:[%s2770_s0 + $0x8] sm:$0xff] }
  0x51   : > { %v963_v15 = vsub.s32 1, %v932_v14  ;;  %v933_v22 = vsub.s32 0, %v932_v14  ;;  %s3145_s24 = sld [smem:[#allocation5_spill]]  ;;  %v1038_v42 = vld [vmem:[%s2770_s0] sm:$0xff] }
  0x52   : > { %s3146_s23 = sld [smem:[#allocation11_spill]] }
  0x53   : > { %v2831_v1 = vld [vmem:[%s2826_s20] sm:$0xff]  ;;  %v2865_v17 = vrot.slane %v955_v16, %v963_v15  ;;  %v960_v23 = vrot.slane %v955_v16, %v933_v22 }
  0x54   : > { %2346 = vmatpush3.xpose.msk.msra.mxu0 %vm777_vm1, %v2831_v1  ;;  %v851_v3 = vmul.f32 %v2831_v1, %v2831_v1 }
  0x55   : > { %2350 = vmatprep.subr.mxu0 %v2588_v2 }
  0x56   : > { %v852_v26 = vsel %vm777_vm1, %v851_v3, 0.0 }
  0x57   : > { %2348 = vmatmul.mubr.msk.f32.vlgmr.msra.gmra.mxu0 %vm777_vm1, %v2831_v1  ;;  %s2893_s19 = sshll.u32 %s3145_s24, 7  ;;  %s3147_s24 = sld [smem:[#allocation13_spill]] }
  0x58   : > { %2351 = vmatpush3.xpose.msk.msra.mxu0 %vm777_vm1, %v851_v3  ;;  %2352 = vmatprep.mubr.msk.f32.mxu0 %vm2589_vm2, %v2588_v2  ;;  %s1129_s28 = sadd.s32 4, %s2893_s19  ;;  %s1125_s16 = sld [smem:[#allocation2 + %s2893_s19]] }
  0x59   : > { %991 = vmatprep.subr.mxu0 %v954_v4  ;;  %s1230_s3 = sadd.s32 1, %s2893_s19  ;;  %s1130_s30 = sld [smem:[#allocation2 + %s1129_s28]] }
  0x5a   : > { %s1235_s4 = sadd.s32 5, %s2893_s19  ;;  %s1134_s25 = sadd.s32 8, %s2893_s19 }
  0x5b   : > { %2353 = vmatmul.mubr.msk.f32.vlgmr.msra.gmra.mxu0 %vm777_vm1, %v2590_v7  ;;  %s1231_s27 = sld [smem:[#allocation2 + %s1230_s3]] }
  0x5c   : > { %992 = vmatpush1.msra.mxu0 %v953_v5  ;;  %1031 = vmatprep.mubr.f32.mxu0 %v2588_v2 }
  0x5d   : > { %993 = vmatprep.subr.mxu0 %v952_v6  ;;  %s3148_s28 = scalar_lea.vmem %s3147_s24, %s3146_s23  ;;  %s2598_s23 = smov 104  }
  0x5e   : > { %994 = vmatpush1.msra.mxu0 %v951_v8  ;;  %v2918_v44 = vld [vmem:[%s3148_s28] ss:$0 sm:$0xff]  ;;  %v1126_v46 = vstv %s1125_s16  ;;  %s2597_s16 = smov 80   ;;  %s1678_s28 = sadd.s32 11, %s2893_s19 }
  0x5f   : > { %995 = vmatprep.subr.mxu0 %v950_v9  ;;  %v1131_v50 = vstv %s1130_s30  ;;  %s1488_s30 = sadd.s32 2, %s2893_s19 }
  0x60   : > { %996 = vmatpush1.msra.mxu0 %v949_v10 }
  0x61   : > { %997 = vmatprep.subr.mxu0 %v948_v11  ;;  %v1232_v54 = vstv %s1231_s27  ;;  %s1668_s27 = sadd.s32 3, %s2893_s19 }
  0x62   : > { %998 = vmatpush1.msra.mxu0 %v947_v12 }
  0x63   : > { %2271 = vmatmul.mubr.msk.f32.vlgmr.msra.gmra.mxu0 %vm777_vm1, %v2831_v1  ;;  %2355 = vmatprep.subr.mxu0 %v2588_v2 }
  0x64   : > { %2357 = vmatprep.mubr.msk.f32.mxu0 %vm2589_vm2, %v2588_v2 }
 0x117   : > { %v847_v18 = vpop.f32.mrf.mxu0 }
 0x118   : > { %v936_v32 = vmul.f32 2.0, %v847_v18 }
 0x119   : > { %v2349_v19 = vpop.f32.mrf.mxu0 }
 0x11b   : > { %v927_v20 = vpop.f32.mrf.mxu0 }
 0x11c   : > { %v934_v30 = vrot.slane %v927_v20, %v933_v22 }
 0x11d   : > { %v2354_v21 = vpop.f32.mrf.mxu0 }
 0x123   : > { %v1033_v24 = vpop.f32.mrf.mxu0 }
 0x124   : > { %v2867_v25 = vadd.f32 %v1033_v24, %v960_v23 }
 0x125   : > { %v2905_v40 = vpop.f32.mrf.mxu0 }
 0x126   : > { %1151 = vrot.lane.b32.xlu1 %v2867_v25, %s2591_s7  ;;  %1040 = vrot.lane.b32.xlu0 %v2867_v25, %s2592_s8  ;;  %s2903_s7 = sld [smem:[#allocation2 + %s1235_s4]]  ;;  %s1493_s4 = sadd.s32 6, %s2893_s19 }
 0x12a   : > { %1153 = vrot.lane.b32.xlu0 %v2867_v25, %s2593_s9  ;;  %s1135_s9 = sld [smem:[#allocation2 + %s1134_s25]] }
 0x12b   : > { %s1489_s25 = sld [smem:[#allocation2 + %s1488_s30]] }
 0x12c   : > { %v1237_v60 = vstv %s2903_s7  ;;  %s1494_s7 = sld [smem:[#allocation2 + %s1493_s4]] }
 0x130   : > { %v1136_v59 = vstv %s1135_s9  ;;  %s1673_s9 = sadd.s32 7, %s2893_s19 }
 0x14a   : > { %853 = vadd.xlane.f32.xlu1 %v852_v26 }
 0x15b   : > { %1255 = vrot.lane.b32.xlu1 %v2867_v25, %s2594_s2  ;;  %s1240_s2 = sadd.s32 9, %s2893_s19 }
 0x15c   : > { %s1241_s3 = sld [smem:[#allocation2 + %s1240_s2]]  ;;  %s1498_s2 = sadd.s32 10, %s2893_s19 }
 0x15d   : > { %s1499_s24 = sld [smem:[#allocation2 + %s1498_s2]] }
 0x15e   : > { %s3152_s2 = sld [smem:[#allocation20_spill]] }
 0x15f   : > { %1409 = vrot.lane.b32.xlu1 %v2867_v25, %s2595_s10  ;;  %s1669_s10 = sld [smem:[#allocation2 + %s1668_s27]] }
 0x160   : > { %s3150_s27 = sld [smem:[#allocation14_spill]] }
 0x162   : > { %v1242_v5 = vstv %s1241_s3  ;;  %s1679_s3 = sld [smem:[#allocation2 + %s1678_s28]] }
 0x163   : > { %1591 = vrot.lane.b32.xlu1 %v2867_v25, %s2596_s18  ;;  %s1674_s18 = sld [smem:[#allocation2 + %s1673_s9]] }
 0x198   : > { %v1041_v27 = vpop.permute.xlu0 %1040  ;;  %v1152_v29 = vpop.permute.xlu1 %1151 }
 0x199   : > { %2356 = vmatpush3.xpose.msk.msra.mxu0 %vm1042_vm3, %v1041_v27 }
 0x19a   : > { %2360 = vmatprep.subr.mxu0 %v2588_v2 }
 0x19c   : > { %2358 = vmatmul.mubr.msk.f32.vlgmr.msra.gmra.mxu0 %vm1042_vm3, %v2867_v25  ;;  %v1154_v28 = vpop.permute.xlu0 %1153 }
 0x19d   : > { %2361 = vmatpush3.xpose.msk.msra.mxu0 %vm1042_vm3, %v1154_v28  ;;  %2362 = vmatprep.mubr.msk.f32.mxu0 %vm2589_vm2, %v2588_v2 }
 0x19e   : > { %2365 = vmatprep.subr.mxu0 %v2588_v2 }
 0x1a0   : > { %2363 = vmatmul.mubr.msk.f32.vlgmr.msra.gmra.mxu0 %vm1042_vm3, %v1152_v29 }
 0x1a1   : > { %2367 = vmatprep.mubr.msk.f32.mxu0 %vm2589_vm2, %v2588_v2 }
 0x1d3   : > { %v854_v31 = vpop.xlane.xlu1 %853 }
 0x1d4   : > { %v935_v33 = vadd.f32 %v934_v30, %v854_v31  ;;  %v2281_v31 = vld [vmem:[%s2770_s0 + $0x10] sm:$0xff] }
 0x1d6   : > { %v937_v34 = vsub.f32 %v935_v33, %v936_v32  ;;  %v1490_v33 = vstv %s1489_s25 }
 0x1d7   : > { %v1256_v35 = vpop.permute.xlu1 %1255 }
 0x1d8   : > { %2366 = vmatpush3.msra.mxu0 %v1256_v35  ;;  %v2889_v36 = vmax.f32 %v937_v34, 0.0 }
 0x1d9   : > { %2375 = vmatprep.subr.mxu0 %v2588_v2 }
 0x1da   : > { %2506 = vrsqrt.f32 %v2889_v36  ;;  %vm941_vm4 = vcmp.eq.f32.partialorder %v2889_v36, inf  ;;  %v944_v41 = vand.u32 2147483648, %v2889_v36  ;;  %vm943_vm5 = vcmp.eq.f32.partialorder %v2889_v36, 0.0 }
 0x1db   : > { %v1132_v57 = vmul.f32 %v1131_v50, %v2889_v36  ;;  %v1238_v4 = vmul.f32 %v1237_v60, %v2889_v36  ;;  %v1410_v10 = vpop.permute.xlu1 %1409  ;;  %v1500_v50 = vstv %s1499_s24  ;;  %s3154_s24 = scalar_lea.vmem %s3100_s11, %s2748_s26 }
 0x1df   : > { %v1592_v11 = vpop.permute.xlu1 %1591 }
 0x1e7   : > { %v2507_v37 = vpop.eup %2506 }
 0x1e8   : > { %v940_v38 = vmul.f32 %v2507_v37, %v2889_v36  ;;  %v2285_v37 = vld [vmem:[%s2770_s0 + $0x18] sm:$0xff]  ;;  %s2599_s0 = smov 64  }
 0x1ea   : > { %v942_v39 = vsel %vm941_vm4, %v2889_v36, %v940_v38  ;;  %v1495_v38 = vstv %s1494_s7 }
 0x1eb   : > { %v2911_v43 = vsel %vm943_vm5, %v944_v41, %v942_v39 }
 0x1ec   : > { %v1127_v52 = vmul.f32 %v1126_v46, %v2911_v43  ;;  %v1233_v62 = vmul.f32 %v1232_v54, %v2911_v43  ;;  %v1491_v41 = vmul.f32 %v1490_v33, %v2911_v43 }
 0x25c   : > { %v1113_v45 = vpop.f32.mrf.mxu0 }
 0x25d   : > { %v1114_v47 = vadd.f32 %v1113_v45, %v1038_v42  ;;  %v1670_v45 = vstv %s1669_s10  ;;  %s3153_s10 = scalar_lea.vmem %s3152_s2, %s2748_s26 }
 0x25e   : > { %v2359_v48 = vpop.f32.mrf.mxu0 }
 0x25f   : > { %v1123_v51 = vadd.f32 %v2918_v44, %v1114_v47  ;;  %v1496_v48 = vmul.f32 %v1495_v38, %v2889_v36  ;;  %v1813_v38 = vld [vmem:[%s2790_s21 + $0x18] sm:$0xff] }
 0x260   : > { %v1225_v53 = vpop.f32.mrf.mxu0 }
 0x261   : > { %v1128_v55 = vadd.f32 %v1127_v52, %v1123_v51  ;;  %v1226_v56 = vadd.f32 %v2276_v49, %v1225_v53  ;;  %v1675_v51 = vstv %s1674_s18  ;;  %v1671_v53 = vmul.f32 %v1670_v45, %v2911_v43  ;;  %v1909_v45 = vld [vmem:[%s2800_s22 + $0x70] sm:$0xff] }
 0x262   : > { %v2364_v58 = vpop.f32.mrf.mxu0 }
 0x263   : > { %v1229_v61 = vadd.f32 %v2918_v44, %v1226_v56  ;;  %v1133_v63 = vadd.f32 %v1132_v57, %v1128_v55  ;;  %v1676_v57 = vmul.f32 %v1675_v51, %v2889_v36  ;;  %v1680_v58 = vstv %s1679_s3  ;;  %v1903_v51 = vld [vmem:[%s2800_s22 + $0x40] sm:$0xff] }
 0x265   : > { %v1234_v0 = vadd.f32 %v1233_v62, %v1229_v61  ;;  %v1137_v3 = vadd.f32 %v1136_v59, %v1133_v63 }
 0x267   : > { %v1138_v6 = vsel %vm1042_vm3, %v1137_v3, -inf  ;;  %v1239_v7 = vadd.f32 %v1238_v4, %v1234_v0 }
 0x268   : > { %1139 = vmax.xlane.f32.xlu1 %v1138_v6 }
 0x269   : > { %v1243_v8 = vadd.f32 %v1242_v5, %v1239_v7 }
 0x26b   : > { %v1244_v9 = vsel %vm1042_vm3, %v1243_v8, -inf }
 0x26c   : > { %1245 = vmax.xlane.f32.xlu0 %v1244_v9 }
 0x2f1   : > { %v1140_v12 = vpop.xlane.xlu1 %1139 }
 0x2f2   : > { %v1141_v13 = vsub.f32 %v1137_v3, %v1140_v12 }
 0x2f4   : > { %v1142_v14 = vmul.f32 1.442695, %v1141_v13 }
 0x2f5   : > { %v1246_v15 = vpop.xlane.xlu0 %1245 }
 0x2f6   : > { %2508 = vpow2.f32 %v1142_v14  ;;  %v1247_v16 = vsub.f32 %v1243_v8, %v1246_v15  ;;  %v1036_v8 = vadd.f32 %v2905_v40, %v2865_v17 }
 0x2f8   : > { %v1248_v18 = vmul.f32 1.442695, %v1247_v16 }
 0x2fa   : > { %2510 = vpow2.f32 %v1248_v18 }
 0x303   : > { %v2930_v19 = vpop.eup %2508 }
 0x304   : > { %v1144_v20 = vsel %vm1042_vm3, %v2930_v19, 0.0 }
 0x305   : > { %1145 = vadd.xlane.f32.xlu1 %v1144_v20 }
 0x307   : > { %v2511_v21 = vpop.eup %2510 }
 0x308   : > { %v1250_v22 = vsel %vm1042_vm3, %v2511_v21, 0.0 }
 0x309   : > { %1251 = vadd.xlane.f32.xlu0 %v1250_v22 }
 0x31f   : > { %1411 = vrot.lane.b32.xlu0 %v2867_v25, %s2597_s16  ;;  %s3149_s16 = scalar_lea.vmem %s3095_s6, %s2748_s26 }
 0x323   : > { %1589 = vrot.lane.b32.xlu0 %v2867_v25, %s2598_s23 }
 0x38e   : > { %v1146_v9 = vpop.xlane.xlu1 %1145 }
 0x392   : > { %v1252_v23 = vpop.xlane.xlu0 %1251 }
 0x393   : > { %2512 = vrcp.f32 %v1252_v23 }
 0x396   : > { %v1412_v27 = vpop.permute.xlu0 %1411 }
 0x39a   : > { %v1590_v28 = vpop.permute.xlu0 %1589 }
 0x3a0   : > { %v2513_v24 = vpop.eup %2512 }
 0x3a1   : > { %v1254_v26 = vmul.f32 %v2513_v24, %v2511_v21 }
 0x3a3   : > { %2368 = vmatmul.mubr.msk.f32.vlgmr.msra.gmra.mxu0 %vm1042_vm3, %v1254_v26  ;;  %v2289_v26 = vld [vmem:[%s3149_s16] ss:$0 sm:$0xff] }
 0x3a4   : > { %2376 = vmatpush3.xpose.msk.msra.mxu0 %vm1042_vm3, %v1412_v27  ;;  %2377 = vmatprep.mubr.msk.f32.mxu0 %vm2589_vm2, %v2588_v2 }
 0x3a5   : > { %2385 = vmatprep.subr.mxu0 %v2588_v2 }
 0x3a7   : > { %2378 = vmatmul.mubr.msk.f32.vlgmr.msra.gmra.mxu0 %vm1042_vm3, %v1410_v10 }
 0x3a8   : > { %2386 = vmatpush3.xpose.msk.msra.mxu0 %vm1042_vm3, %v1592_v11  ;;  %2387 = vmatprep.mubr.msk.f32.mxu0 %vm2589_vm2, %v2588_v2 }
 0x3a9   : > { %2395 = vmatprep.subr.mxu0 %v2588_v2 }
 0x3ab   : > { %2388 = vmatmul.mubr.msk.f32.vlgmr.msra.gmra.mxu0 %vm1042_vm3, %v1590_v28 }
 0x3ac   : > { %2403 = vmatprep.mubr.msk.f32.mxu0 %vm2589_vm2, %v2588_v2  ;;  %2396 = vmatpush3.msra.mxu0 %v1813_v38 }
 0x3ad   : > { %2397 = vmatprep.subr.mxu0 %v2588_v2 }
 0x463   : > { %v2955_v29 = vpop.f32.mrf.mxu0 }
 0x465   : > { %v2369_v30 = vpop.f32.mrf.mxu0 }
 0x467   : > { %v1483_v32 = vpop.f32.mrf.mxu0 }
 0x468   : > { %v1484_v34 = vadd.f32 %v2281_v31, %v1483_v32 }
 0x469   : > { %v2379_v35 = vpop.f32.mrf.mxu0 }
 0x46a   : > { %v1487_v39 = vadd.f32 %v2918_v44, %v1484_v34 }
 0x46b   : > { %v1663_v42 = vpop.f32.mrf.mxu0 }
 0x46c   : > { %v1492_v46 = vadd.f32 %v1491_v41, %v1487_v39  ;;  %v1664_v47 = vadd.f32 %v2285_v37, %v1663_v42  ;;  %v1812_v39 = vld [vmem:[%s2790_s21 + $0x10] sm:$0xff]  ;;  %v1810_v41 = vld [vmem:[%s2790_s21] sm:$0xff]  ;;  %v1910_v42 = vld [vmem:[%s2800_s22 + $0x78] sm:$0xff] }
 0x46d   : > { %v2389_v49 = vpop.f32.mrf.mxu0  ;;  %2398 = vmatpush3.msra.mxu0 %v1812_v39 }
 0x46e   : > { %v1667_v52 = vadd.f32 %v2918_v44, %v1664_v47  ;;  %v1497_v54 = vadd.f32 %v1496_v48, %v1492_v46  ;;  %2399 = vmatprep.subr.mxu0 %v2588_v2  ;;  %v1908_v46 = vld [vmem:[%s2800_s22 + $0x68] sm:$0xff]  ;;  %v1907_v47 = vld [vmem:[%s2800_s22 + $0x60] sm:$0xff]  ;;  %v1906_v48 = vld [vmem:[%s2800_s22 + $0x58] sm:$0xff] }
 0x46f   : > { %v1905_v49 = vld [vmem:[%s2800_s22 + $0x50] sm:$0xff] }
 0x470   : > { %v1672_v55 = vadd.f32 %v1671_v53, %v1667_v52  ;;  %v1501_v56 = vadd.f32 %v1500_v50, %v1497_v54  ;;  %v1904_v50 = vld [vmem:[%s2800_s22 + $0x48] sm:$0xff]  ;;  %v1902_v52 = vld [vmem:[%s2800_s22 + $0x38] sm:$0xff]  ;;  %v1901_v53 = vld [vmem:[%s2800_s22 + $0x30] sm:$0xff] }
 0x471   : > { %v1900_v54 = vld [vmem:[%s2800_s22 + $0x28] sm:$0xff] }
 0x472   : > { %v1502_v59 = vsel %vm1042_vm3, %v1501_v56, -inf  ;;  %v1677_v60 = vadd.f32 %v1676_v57, %v1672_v55  ;;  %v1899_v55 = vld [vmem:[%s2800_s22 + $0x20] sm:$0xff] }
 0x473   : > { %1503 = vmax.xlane.f32.xlu0 %v1502_v59 }
 0x474   : > { %v1681_v61 = vadd.f32 %v1680_v58, %v1677_v60 }
 0x476   : > { %v1682_v62 = vsel %vm1042_vm3, %v1681_v61, -inf }
 0x477   : > { %1683 = vmax.xlane.f32.xlu0 %v1682_v62 }
 0x4fc   : > { %v1504_v63 = vpop.xlane.xlu0 %1503 }
 0x4fd   : > { %v1505_v0 = vsub.f32 %v1501_v56, %v1504_v63  ;;  %v1898_v56 = vld [vmem:[%s2800_s22 + $0x18] sm:$0xff]  ;;  %v2291_v63 = vld [vmem:[%s758_s5] ss:$0 sm:$0xff]  ;;  %s3151_s5 = scalar_lea.vmem %s3150_s27, %s2751_s29 }
 0x4ff   : > { %v1506_v3 = vmul.f32 1.442695, %v1505_v0 }
 0x500   : > { %v1684_v44 = vpop.xlane.xlu0 %1683 }
 0x501   : > { %2514 = vpow2.f32 %v1506_v3  ;;  %v1685_v43 = vsub.f32 %v1681_v61, %v1684_v44  ;;  %v2290_v61 = vld [vmem:[%s755_s15] ss:$0 sm:$0xff]  ;;  %v1897_v44 = vld [vmem:[%s2800_s22 + $0x10] sm:$0xff] }
 0x503   : > { %v1686_v4 = vmul.f32 1.442695, %v1685_v43  ;;  %v1896_v43 = vld [vmem:[%s2800_s22 + $0x8] sm:$0xff] }
 0x505   : > { %2516 = vpow2.f32 %v1686_v4  ;;  %v1895_v4 = vld [vmem:[%s2800_s22] sm:$0xff] }
 0x506   : > { %2518 = vrcp.f32 %v1146_v9 }
 0x50e   : > { %v2515_v5 = vpop.eup %2514 }
 0x50f   : > { %v1508_v36 = vsel %vm1042_vm3, %v2515_v5, 0.0 }
 0x510   : > { %1509 = vadd.xlane.f32.xlu0 %v1508_v36  ;;  %v2600_v36 = vmov 0  }
 0x511   : > { %2505 = vset.pattern.permute.xlu0 %v2600_v36 }
 0x512   : > { %v2517_v6 = vpop.eup %2516 }
 0x513   : > { %v1688_v7 = vsel %vm1042_vm3, %v2517_v6, 0.0  ;;  %v2519_v11 = vpop.eup %2518 }
 0x514   : > { %1689 = vadd.xlane.f32.xlu1 %v1688_v7  ;;  %v1148_v14 = vmul.f32 %v2519_v11, %v2930_v19 }
 0x525   : > { %1694 = vrot.lane.b32.xlu1 %v1036_v8, %s2592_s8 }
 0x526   : > { %1331 = vrot.lane.b32.xlu0 %v2867_v25, %s2599_s0 }
 0x599   : > { %v1510_v10 = vpop.xlane.xlu0 %1509 }
 0x59a   : > { %2520 = vrcp.f32 %v1510_v10 }
 0x59d   : > { %v1690_v12 = vpop.xlane.xlu1 %1689  ;;  %v1332_v13 = vpop.permute.xlu0 %1331 }
 0x59e   : > { %2522 = vrcp.f32 %v1690_v12  ;;  %2371 = vmatpush3.msra.mxu1 %v1332_v13 }
 0x59f   : > { %2373 = vmatmul.mubr.msk.f32.vlgmr.msra.gmra.mxu1 %vm1042_vm3, %v1148_v14  ;;  %2380 = vmatprep.subr.mxu1 %v2588_v2 }
 0x5a0   : > { %2381 = vmatpush3.msra.mxu1 %v1036_v8  ;;  %2382 = vmatprep.mubr.msk.f32.mxu1 %vm2589_vm2, %v2588_v2 }
 0x5a1   : > { %2390 = vmatprep.subr.mxu1 %v2588_v2  ;;  %v1695_v40 = vpop.permute.xlu1 %1694 }
 0x5a7   : > { %v2521_v17 = vpop.eup %2520 }
 0x5a8   : > { %v1512_v25 = vmul.f32 %v2521_v17, %v2515_v5  ;;  %v1988_v5 = vld [vmem:[%s3151_s5] sm:$0xff] }
 0x5aa   : > { %2383 = vmatmul.mubr.msk.f32.vlgmr.msra.gmra.mxu1 %vm1042_vm3, %v1512_v25 }
 0x5ab   : > { %v2523_v15 = vpop.eup %2522  ;;  %2391 = vmatpush3.msra.mxu1 %v1695_v40  ;;  %2392 = vmatprep.mubr.msk.f32.mxu1 %vm2589_vm2, %v2588_v2 }
 0x5ac   : > { %v1692_v16 = vmul.f32 %v2523_v15, %v2517_v6  ;;  %2406 = vmatprep.subr.mxu1 %v2588_v2  ;;  %v2292_v6 = vld [vmem:[%s3153_s10] ss:$0 sm:$0xff] }
 0x5ae   : > { %2393 = vmatmul.mubr.msk.f32.vlgmr.msra.gmra.mxu1 %vm1042_vm3, %v1692_v16 }
 0x5af   : > { %2438 = vmatprep.mubr.msk.f32.mxu1 %vm2589_vm2, %v2588_v2  ;;  %2407 = vmatpush3.msra.mxu1 %v1910_v42 }
 0x5b0   : > { %2408 = vmatprep.subr.mxu1 %v2588_v2 }
 0x5b1   : > { %2409 = vmatpush3.msra.mxu1 %v1909_v45 }
 0x5b2   : > { %2410 = vmatprep.subr.mxu1 %v2588_v2 }
 0x5b3   : > { %2411 = vmatpush3.msra.mxu1 %v1908_v46 }
 0x5b4   : > { %2412 = vmatprep.subr.mxu1 %v2588_v2 }
 0x5b5   : > { %2413 = vmatpush3.msra.mxu1 %v1907_v47 }
 0x5b6   : > { %2414 = vmatprep.subr.mxu1 %v2588_v2 }
 0x5b7   : > { %2415 = vmatpush3.msra.mxu1 %v1906_v48 }
 0x5b8   : > { %2416 = vmatprep.subr.mxu1 %v2588_v2 }
 0x5b9   : > { %2417 = vmatpush3.msra.mxu1 %v1905_v49 }
 0x5ba   : > { %2418 = vmatprep.subr.mxu1 %v2588_v2 }
 0x5bb   : > { %2419 = vmatpush3.msra.mxu1 %v1904_v50 }
 0x5bc   : > { %2420 = vmatprep.subr.mxu1 %v2588_v2 }
 0x5bd   : > { %2421 = vmatpush3.msra.mxu1 %v1903_v51 }
 0x5be   : > { %2422 = vmatprep.subr.mxu1 %v2588_v2 }
 0x5bf   : > { %2423 = vmatpush3.msra.mxu1 %v1902_v52 }
 0x5c0   : > { %2424 = vmatprep.subr.mxu1 %v2588_v2 }
 0x5c1   : > { %2425 = vmatpush3.msra.mxu1 %v1901_v53 }
 0x5c2   : > { %2426 = vmatprep.subr.mxu1 %v2588_v2 }
 0x5c3   : > { %2427 = vmatpush3.msra.mxu1 %v1900_v54 }
 0x5c4   : > { %2428 = vmatprep.subr.mxu1 %v2588_v2 }
 0x5c5   : > { %2429 = vmatpush3.msra.mxu1 %v1899_v55 }
 0x5c6   : > { %2430 = vmatprep.subr.mxu1 %v2588_v2 }
 0x5c7   : > { %2431 = vmatpush3.msra.mxu1 %v1898_v56 }
 0x5c8   : > { %2432 = vmatprep.subr.mxu1 %v2588_v2 }
 0x5c9   : > { %2433 = vmatpush3.msra.mxu1 %v1897_v44 }
 0x5ca   : > { %2434 = vmatprep.subr.mxu1 %v2588_v2 }
 0x5cb   : > { %2435 = vmatpush3.msra.mxu1 %v1896_v43 }
 0x5cc   : > { %2436 = vmatprep.subr.mxu1 %v2588_v2 }
 0x5cd   : > { %2437 = vmatpush3.msra.mxu1 %v1895_v4 }
 0x65f   : > { %v1403_v18 = vpop.f32.mrf.mxu1 }
 0x660   : > { %v1404_v21 = vadd.f32 %v1403_v18, %v2955_v29 }
 0x661   : > { %v2374_v19 = vpop.f32.mrf.mxu1 }
 0x66a   : > { %v1582_v20 = vpop.f32.mrf.mxu1 }
 0x66b   : > { %v1586_v23 = vadd.f32 %v1582_v20, %v1404_v21 }
 0x66c   : > { %v2384_v22 = vpop.f32.mrf.mxu1 }
 0x66e   : > { %v1766_v24 = vpop.f32.mrf.mxu1 }
 0x66f   : > { %v1770_v27 = vadd.f32 %v1766_v24, %v1586_v23 }
 0x670   : > { %v2394_v28 = vpop.f32.mrf.mxu1 }
 0x671   : > { %v1778_v30 = vadd.f32 %v2289_v26, %v1770_v27  ;;  %v2295_v26 = vld [vmem:[%s761_s1] ss:$0 sm:$0xff] }
 0x672   : > { %v2296_v28 = vld [vmem:[%s764_s17] ss:$0 sm:$0xff] }
 0x673   : > { %v1779_v31 = vadd.f32 %v1778_v30, %v2831_v1  ;;  %v1811_v1 = vld [vmem:[%s2790_s21 + $0x8] sm:$0xff] }
 0x674   : > { %2400 = vmatpush3.msra.mxu0 %v1811_v1 }
 0x675   : > { %v1782_v32 = vsel %vm777_vm1, %v1779_v31, 0.0  ;;  %2401 = vmatprep.subr.mxu0 %v2588_v2  ;;  %v2294_v2 = vld [vmem:[%s3154_s24] ss:$0 sm:$0xff] }
 0x676   : > { %1783 = vadd.xlane.f32.xlu1 %v1782_v32  ;;  %2402 = vmatpush3.msra.mxu0 %v1810_v41 }
 0x6ff   : > { %v1784_v29 = vpop.xlane.xlu1 %1783 }
 0x700   : > { %v1786_v33 = vmul.f32 0.03125, %v1784_v29 }
 0x702   : > { %v1787_v34 = vsub.f32 %v1779_v31, %v1786_v33 }
 0x704   : > { %v1788_v35 = vmul.f32 %v1787_v34, %v1787_v34 }
 0x706   : > { %v1789_v37 = vsel %vm777_vm1, %v1788_v35, 0.0 }
 0x707   : > { %1790 = vadd.xlane.f32.xlu0 %v1789_v37 }
 0x71d   : > { %1991 = vperm.xlu0 %2505, %v1988_v5  }
 0x790   : > { %v1791_v57 = vpop.xlane.xlu0 %1790 }
 0x791   : > { %v1792_v58 = vmul.f32 0.03125, %v1791_v57 }
 0x793   : > { %v1793_v59 = vadd.f32 1e-05, %v1792_v58 }
 0x795   : > { %2524 = vrsqrt.f32 %v1793_v59 }
 0x798   : > { %v1992_v12 = vpop.permute.xlu0 %1991 }
 0x7a2   : > { %v2525_v60 = vpop.eup %2524 }
 0x7a3   : > { %v1795_v62 = vmul.f32 %v2525_v60, %v1787_v34 }
 0x7a5   : > { %v1802_v0 = vmul.f32 %v2290_v61, %v1795_v62 }
 0x7a7   : > { %v1809_v3 = vadd.f32 %v2291_v63, %v1802_v0 }
 0x7a9   : > { %2404 = vmatmul.mubr.msk.f32.vlgmr.msra.gmra.mxu0 %vm777_vm1, %v1809_v3 }
 0x869   : > { %v1890_v7 = vpop.f32.mrf.mxu0 }
 0x86a   : > { %v1891_v8 = vadd.f32 %v2292_v6, %v1890_v7 }
 0x86b   : > { %v2405_v9 = vpop.f32.mrf.mxu0 }
 0x86c   : > { %v1894_v10 = vmax.f32 %v1891_v8, 0.0 }
 0x86e   : > { %2439 = vmatmul.mubr.f32.vlgmr.msra.gmra.mxu1 %v1894_v10 }
 0x92e   : > { %v1984_v11 = vpop.f32.mrf.mxu1 }
 0x92f   : > { %v1985_v13 = vadd.f32 %v2294_v2, %v1984_v11 }
 0x930   : > { %v2440_v14 = vpop.f32.mrf.mxu1 }
 0x931   : > { %v1994_v17 = vmul.f32 %v1992_v12, %v1985_v13 }
 0x933   : > { %v1995_v25 = vadd.f32 %v1994_v17, %v1809_v3 }
 0x935   : > { %v1998_v40 = vsel %vm777_vm1, %v1995_v25, 0.0 }
 0x936   : > { %1999 = vadd.xlane.f32.xlu1 %v1998_v40 }
 0x9bf   : > { %v2000_v15 = vpop.xlane.xlu1 %1999 }
 0x9c0   : > { %v2001_v16 = vmul.f32 0.03125, %v2000_v15 }
 0x9c2   : > { %v2002_v18 = vsub.f32 %v1995_v25, %v2001_v16 }
 0x9c4   : > { %v2003_v19 = vmul.f32 %v2002_v18, %v2002_v18 }
 0x9c6   : > { %v2004_v20 = vsel %vm777_vm1, %v2003_v19, 0.0 }
 0x9c7   : > { %2005 = vadd.xlane.f32.xlu1 %v2004_v20 }
 0xa50   : > { %v2006_v21 = vpop.xlane.xlu1 %2005 }
 0xa51   : > { %v2007_v22 = vmul.f32 0.03125, %v2006_v21 }
 0xa53   : > { %v2008_v23 = vadd.f32 1e-05, %v2007_v22 }
 0xa55   : > { %2526 = vrsqrt.f32 %v2008_v23 }
 0xa62   : > { %v2527_v24 = vpop.eup %2526 }
 0xa63   : > { %v2010_v27 = vmul.f32 %v2527_v24, %v2002_v18 }
 0xa65   : > { %v2017_v30 = vmul.f32 %v2295_v26, %v2010_v27 }
 0xa67   : > { %v2024_v31 = vadd.f32 %v2296_v28, %v2017_v30 }
 0xa69   : > { %2025 = vst.msk [vmem:[%s2826_s20] sm:$0xff] %vm777_vm1, %v2024_v31 }
 0xa6a PF: > { %s3156_s19 = sld [smem:[#allocation8_spill]] }
 0xa6b   : > { %s3157_s21 = sld [smem:[#allocation6_spill]] }
 0xa6c   : > { %s3158_s22 = sld [smem:[#allocation7_spill]] }
 0xa6d   : > { %s3159_s23 = sld [smem:[#allocation9_spill]] }
 0xa6e   : > { %s3160_s24 = sld [smem:[#allocation10_spill]] }
 0xa70   : > { %s27_s25 = sadd.s32 1, %s3156_s19  }
 0xa71   : > { %p24_p5 = scmp.ge.s32.totalorder %s27_s25, 8  }
 0xa73   :  { %26 = sbr.rel (!%p24_p5) target bundleno = 16 (0x10), region = 168 }
 0xa78   :  { %2045 = vsyncpa [#allocation3], 1 }
 0xa79   :  { %2047 = vsyncpa [#allocation3 + $0x1], 1 }

</bundles_post_ra>
